<compile_context>
chip_gen: v5e
topology: v5e:2x2
jax: 0.10.0
libtpu: 0.0.40
codegen_flags: <defaults>
</compile_context>

<pallas_src>
import functools

import jax
import jax.numpy as jnp
from jax.experimental import pallas as pl
from jax.experimental.pallas import tpu as pltpu


CFG = dict(
    number_rooms=3,
    temperature_column=[0, 1, 2],   # room index == column index
    power_column=[3, 4, 5],
    out_column=6,
    case_column=7,
    inputs_D=[0, 1, 2, 3, 4, 5, 6, 8, 9],
    outside_walls=[0, 2],
    neighboring_rooms=[(0, 1), (1, 2)],
    input_nn_hidden_sizes=[16],
    lstm_hidden_size=32,
    lstm_num_layers=1,
    output_nn_hidden_sizes=[16],
    layer_norm=True,
    feed_input_through_nn=True,
    learn_initial_hidden_states=False,
    division_factor=10.0,
    eps=1e-6,
    temperature_min=[15.0, 16.0, 17.0],
    temperature_range=[10.0, 11.0, 12.0],
    initial_values=dict(
        a=[1.0e-3, 1.5e-3, 2.0e-3],
        b=[1.0e-4, 2.0e-4],
        c=([1.0e-4, 1.2e-4], [1.1e-4, 1.3e-4]),
        d=[1.0e-3, 1.1e-3, 1.2e-3],
    ),
)


def _round_up(n, m):
    return ((n + m - 1) // m) * m


def s_pcnn_kernel(st,
                  x_ref, small_ref, vecp_ref,
                  w_in_ref, w_ih_ref, w_hh_ref, w_o1_ref, w_o2_ref,
                  out_ref, xg_ref):
    T, BB = st['T'], st['BB']
    H, Hin, Ho, R = st['H'], st['Hin'], st['Ho'], st['R']
    n_ow, n_nb = st['n_ow'], st['n_nb']
    eps = st['eps']
    inv_div = st['inv_div']
    outw = st['outw']

    # ---------- D module: input NN + LSTM gate pre-activations, hoisted ----------
    X = x_ref[...]                                   # (T, BB, Nin), time-major
    # BB is a multiple of 8, so merging (T, BB) keeps every (8,128) tile intact.
    X2 = X.reshape(T * BB, X.shape[-1])
    b_in = vecp_ref[0:1, :Hin]
    e = jnp.maximum(
        jnp.dot(X2, w_in_ref[...], preferred_element_type=jnp.float32) + b_in, 0.0)
    # w_ih / w_hh / b_lstm were pre-scaled by [0.5,0.5,1.0,0.5] per gate block in the
    # wrapper so sigmoid(x) = 0.5*tanh(0.5*x)+0.5 needs only ONE tanh over 4H per step.
    b_lstm = vecp_ref[1:2, :4 * H]
    xg_ref[...] = jnp.dot(e, w_ih_ref[...],
                          preferred_element_type=jnp.float32) + b_lstm  # (T*BB, 4H)

    # ---------- recurrent part: one matmul + one 4H tanh + one H tanh per step ----------
    w_hh = w_hh_ref[...]                             # pre-scaled columns (H, 4H)
    h0 = jnp.zeros((BB, H), jnp.float32)
    c0 = jnp.zeros((BB, H), jnp.float32)

    def lstm_step(gates, h, c):
        t_all = jnp.tanh(gates)                      # single EUP pass over (BB, 4H)
        i_g = 0.5 * t_all[:, 0 * H:1 * H] + 0.5
        f_g = 0.5 * t_all[:, 1 * H:2 * H] + 0.5
        g_g = t_all[:, 2 * H:3 * H]
        o_g = 0.5 * t_all[:, 3 * H:4 * H] + 0.5
        c_new = f_g * c + i_g * g_g
        h_new = o_g * jnp.tanh(c_new)
        return h_new, c_new

    if T <= 16:
        # short sequence: static unroll, static ref slices
        h, c = h0, c0
        for t in range(T):
            gates = xg_ref[t * BB:(t + 1) * BB, :] + jnp.dot(
                h, w_hh, preferred_element_type=jnp.float32)
            h, c = lstm_step(gates, h, c)
    else:
        # long sequence: fori_loop over ref slices keeps live ranges / code size bounded
        def body(t, carry):
            h, c = carry
            off = pl.multiple_of(t * BB, 8)
            gates = xg_ref[pl.ds(off, BB), :] + jnp.dot(
                h, w_hh, preferred_element_type=jnp.float32)
            return lstm_step(gates, h, c)
        h, c = jax.lax.fori_loop(0, T, body, (h0, c0))

    # ---------- LayerNorm over the hidden dim (torch default eps=1e-5) ----------
    mean = jnp.mean(h, axis=-1, keepdims=True)
    var = jnp.mean((h - mean) ** 2, axis=-1, keepdims=True)
    ln = (h - mean) * jax.lax.rsqrt(var + 1e-5) * vecp_ref[2:3, :H] + vecp_ref[3:4, :H]

    # ---------- output NN: (Linear + Tanh) x 2 ----------
    t1 = jnp.tanh(jnp.dot(ln, w_o1_ref[...], preferred_element_type=jnp.float32)
                  + vecp_ref[4:5, :Ho])
    temp = jnp.tanh(jnp.dot(t1, w_o2_ref[...], preferred_element_type=jnp.float32)
                    + vecp_ref[5:6, :R])

    # ---------- physical module E (pure VPU; constants folded in the wrapper) ----------
    small = small_ref[...]                           # (BB, 17) packed features
    x_temp = small[:, 0:R]                           # == last_D on this path
    ow_lin = small[:, R:R + n_ow]                    # affine-normalized wall temps
    nb1_lin = small[:, R + n_ow:R + n_ow + n_nb]
    nb2_lin = small[:, R + n_ow + n_nb:R + n_ow + 2 * n_nb]
    base = R + n_ow + 2 * n_nb
    x_out = small[:, base:base + 1]
    power = small[:, base + 1:base + 1 + R]
    case = small[:, base + 1 + R:base + 2 + R]
    last_E = small[:, base + 2 + R:base + 2 + 2 * R]

    a_eff = vecp_ref[6:7, 0:R]                       # exp(a_logw) * initial_value_a
    d_eff = vecp_ref[6:7, R:2 * R]
    b_eff = vecp_ref[6:7, 2 * R:2 * R + n_ow]
    ce1 = vecp_ref[6:7, 2 * R + n_ow:2 * R + n_ow + n_nb]
    ce2 = vecp_ref[6:7, 2 * R + n_ow + n_nb:2 * R + n_ow + 2 * n_nb]

    D = temp * inv_div + x_temp

    b_term = (ow_lin - x_out) * b_eff                # (BB, n_ow)
    diff = nb1_lin - nb2_lin
    eff1 = diff * ce1
    eff2 = diff * ce2

    # static scatter onto room columns (topology known at trace time), no MXU.
    cols = []
    for r in range(R):
        acc = jnp.zeros((BB, 1), jnp.float32)
        for w, room in enumerate(st['ow_rooms']):
            if room == r:
                acc = acc - b_term[:, w:w + 1]
        for j in range(n_nb):
            if st['nb1_rooms'][j] == r:
                acc = acc - eff1[:, j:j + 1]
            if st['nb2_rooms'][j] == r:
                acc = acc + eff2[:, j:j + 1]
        cols.append(acc)
    E = last_E + jnp.concatenate(cols, axis=1)

    # heating / cooling: dynamic boolean row-indexing replaced by equivalent masked adds
    heating = jnp.max(power, axis=1, keepdims=True) > eps
    cooling = jnp.min(power, axis=1, keepdims=True) < -eps
    E = E + jnp.where(heating, jnp.where(power > eps, power, 0.0) * a_eff, 0.0)
    E = E + jnp.where(cooling, jnp.where(power < -eps, power, 0.0) * d_eff, 0.0)

    out = D + E
    out = jnp.where(case < eps, 0.0, out)

    # single lane-dense output slab padded to `outw` (multiple of 128): [h | c | out | 0]
    pieces = [h, c, out]
    pad = outw - (2 * H + R)
    if pad > 0:
        pieces.append(jnp.zeros((BB, pad), jnp.float32))
    out_ref[...] = jnp.concatenate(pieces, axis=1)


def init_params(key, cfg):
    nin = len(cfg['inputs_D'])
    hin = cfg['input_nn_hidden_sizes'][0]
    H = cfg['lstm_hidden_size']
    ho = cfg['output_nn_hidden_sizes'][0]
    R = cfg['number_rooms']
    ks = jax.random.split(key, 5)

    def xavier(k, out_f, in_f):                      # torch xavier_normal_ on (out, in) weight
        std = (2.0 / (in_f + out_f)) ** 0.5
        return std * jax.random.normal(k, (out_f, in_f), jnp.float32)

    p = {}
    p['w_in'] = xavier(ks[0], hin, nin).T            # (nin, hin)
    p['b_in'] = jnp.zeros((hin,), jnp.float32)
    p['w_ih'] = xavier(ks[1], 4 * H, hin).T          # (hin, 4H), torch gate order i,f,g,o
    p['w_hh'] = xavier(ks[2], 4 * H, H).T            # (H, 4H)
    p['b_lstm'] = jnp.zeros((4 * H,), jnp.float32)   # b_ih + b_hh (both zero-init); if trained
                                                     # torch weights are loaded, sum the biases.
    p['ln_g'] = jnp.ones((H,), jnp.float32)
    p['ln_b'] = jnp.zeros((H,), jnp.float32)
    p['w_o1'] = xavier(ks[3], ho, H).T
    p['b_o1'] = jnp.zeros((ho,), jnp.float32)
    p['w_o2'] = xavier(ks[4], R, ho).T
    p['b_o2'] = jnp.zeros((R,), jnp.float32)
    # DiagonalPositiveLinear log weights (constant 0 init -> exp = 1)
    p['a_logw'] = jnp.zeros((R,), jnp.float32)
    p['b_logw'] = jnp.zeros((len(cfg['outside_walls']),), jnp.float32)
    p['c_logw'] = jnp.zeros((len(cfg['neighboring_rooms']),), jnp.float32)
    p['d_logw'] = jnp.zeros((R,), jnp.float32)
    return p


def s_pcnn_forward(x, params, cfg):
    if x.ndim == 2:
        x = x[:, None, :]
    x = x.astype(jnp.float32)
    B, T, _ = x.shape
    R = cfg['number_rooms']
    H = cfg['lstm_hidden_size']
    Hin = cfg['input_nn_hidden_sizes'][0]
    Ho = cfg['output_nn_hidden_sizes'][0]
    nin = len(cfg['inputs_D'])
    ow = list(cfg['outside_walls'])
    nb1 = [a for a, _ in cfg['neighboring_rooms']]
    nb2 = [b for _, b in cfg['neighboring_rooms']]
    n_ow, n_nb = len(ow), len(nb1)
    temp_cols = jnp.array(cfg['temperature_column'])
    temp_cols_ow = jnp.array([cfg['temperature_column'][i] for i in ow])

    # states=None, warm_start=False path: last_D = last_E = 0, h0 = c0 = 0
    last_D = jnp.zeros((B, R), jnp.float32)
    last_E = jnp.zeros((B, R), jnp.float32)
    x = x.at[:, -1, temp_cols].set(last_D)

    # ---- batch block selection: VMEM-bounded by T, batch padded to the block size, ----
    # ---- and >= 2 blocks for batches >= 16 rows so both v7x TensorCores get work.  ----
    vmem_budget = 20 * 1024 * 1024                   # live working set target per block
    per_row = 6 * max(T, 1) * 512                    # ~bytes/row: X(x2 buf) + e + xg(+scratch)
    bb_cap = max(8, min(256, (vmem_budget // per_row) // 8 * 8))
    B8 = _round_up(B, 8)
    BB = min(bb_cap, B8)
    if B8 >= 16 and B8 <= BB:
        BB = max(8, _round_up(-(-B8 // 2), 8))       # split single block into >= 2
    Bp = _round_up(B, BB)
    grid = (Bp // BB,)

    # ---- D-module sequence input, time-major, batch padded to the block size ----
    d_emb = x[:, :, jnp.array(cfg['inputs_D'])]                # (B, T, nin)
    d_emb = jnp.transpose(d_emb, (1, 0, 2))                    # (T, B, nin)
    d_emb = jnp.pad(d_emb, ((0, 0), (0, Bp - B), (0, 0)))

    # ---- packed per-batch small features; affine normalization constants folded ----
    x_last = x[:, -1, :]
    trange = jnp.array(cfg['temperature_range'], jnp.float32)
    tmin = jnp.array(cfg['temperature_min'], jnp.float32)

    def lin(v, idx):
        ia = jnp.array(idx)
        return (v - 0.1) / 0.8 * trange[ia] + tmin[ia]

    ow_lin = lin(x_last[:, temp_cols_ow] + last_E[:, jnp.array(ow)], ow)
    nb1_lin = lin(x_last[:, jnp.array(nb1)] + last_E[:, jnp.array(nb1)], nb1)
    nb2_lin = lin(x_last[:, jnp.array(nb2)] + last_E[:, jnp.array(nb2)], nb2)
    small = jnp.concatenate([
        x_last[:, temp_cols],                                   # == last_D
        ow_lin, nb1_lin, nb2_lin,
        x_last[:, jnp.array([cfg['out_column']])],
        x_last[:, jnp.array(cfg['power_column'])],
        x_last[:, jnp.array([cfg['case_column']])],
        last_E,
    ], axis=1)
    small = jnp.pad(small, ((0, Bp - B), (0, 0)))

    # ---- pre-scale the LSTM input/hidden weights + bias by [0.5,0.5,1.0,0.5] per gate ----
    # so the kernel needs a single tanh over 4H per step (sigmoid = 0.5*tanh(0.5x)+0.5).
    gscale = jnp.concatenate([
        jnp.full((H,), 0.5, jnp.float32), jnp.full((H,), 0.5, jnp.float32),
        jnp.ones((H,), jnp.float32), jnp.full((H,), 0.5, jnp.float32)])
    w_ih_s = params['w_ih'] * gscale[None, :]
    w_hh_s = params['w_hh'] * gscale[None, :]
    b_lstm_s = params['b_lstm'] * gscale

    # ---- one (8, W) VMEM tile with all bias / scale / folded physical parameters ----
    W = max(128, _round_up(4 * H, 128))
    iv = cfg['initial_values']
    a_eff = jnp.exp(params['a_logw']) * jnp.array(iv['a'], jnp.float32)
    d_eff = jnp.exp(params['d_logw']) * jnp.array(iv['d'], jnp.float32)
    b_eff = jnp.exp(params['b_logw']) * jnp.array(iv['b'], jnp.float32)
    ce = jnp.exp(params['c_logw'])
    ce1 = ce * jnp.array(iv['c'][0], jnp.float32)
    ce2 = ce * jnp.array(iv['c'][1], jnp.float32)
    phys = jnp.concatenate([a_eff, d_eff, b_eff, ce1, ce2])
    vecp = jnp.zeros((8, W), jnp.float32)
    vecp = vecp.at[0, :Hin].set(params['b_in'])
    vecp = vecp.at[1, :4 * H].set(b_lstm_s)
    vecp = vecp.at[2, :H].set(params['ln_g'])
    vecp = vecp.at[3, :H].set(params['ln_b'])
    vecp = vecp.at[4, :Ho].set(params['b_o1'])
    vecp = vecp.at[5, :R].set(params['b_o2'])
    vecp = vecp.at[6, :phys.shape[0]].set(phys)

    outw = _round_up(2 * H + R, 128)                 # lane-dense output slab (128 lanes)

    st = dict(T=T, BB=BB, H=H, Hin=Hin, Ho=Ho, R=R, n_ow=n_ow, n_nb=n_nb,
              eps=float(cfg['eps']), inv_div=float(1.0 / cfg['division_factor']),
              outw=outw,
              ow_rooms=tuple(ow), nb1_rooms=tuple(nb1), nb2_rooms=tuple(nb2))

    buf = pl.pallas_call(
        functools.partial(s_pcnn_kernel, st),
        grid=grid,
        in_specs=[
            pl.BlockSpec((T, BB, nin), lambda i: (0, i, 0)),
            pl.BlockSpec((BB, small.shape[1]), lambda i: (i, 0)),
            pl.BlockSpec((8, W), lambda i: (0, 0)),
            pl.BlockSpec((nin, Hin), lambda i: (0, 0)),
            pl.BlockSpec((Hin, 4 * H), lambda i: (0, 0)),
            pl.BlockSpec((H, 4 * H), lambda i: (0, 0)),
            pl.BlockSpec((H, Ho), lambda i: (0, 0)),
            pl.BlockSpec((Ho, R), lambda i: (0, 0)),
        ],
        out_specs=pl.BlockSpec((BB, outw), lambda i: (i, 0)),
        out_shape=jax.ShapeDtypeStruct((Bp, outw), jnp.float32),
        scratch_shapes=[pltpu.VMEM((T * BB, 4 * H), jnp.float32)],
        compiler_params=pltpu.CompilerParams(
            dimension_semantics=("parallel",),
            vmem_limit_bytes=32 * 1024 * 1024),
    )(d_emb, small, vecp,
      params['w_in'], w_ih_s, w_hh_s, params['w_o1'], params['w_o2'])

    h = buf[:B, :H]
    c = buf[:B, H:2 * H]
    out = buf[:B, 2 * H:2 * H + R]
    # torch returns (h, c) as (num_layers, B, H); num_layers == 1 here
    return out, (h[None], c[None])


def reference_forward(x, params, cfg):
    """Pure-JAX reference mirroring S_PCNN.forward (states=None, warm_start=False)."""
    if x.ndim == 2:
        x = x[:, None, :]
    x = x.astype(jnp.float32)
    B, T, _ = x.shape
    R = cfg['number_rooms']
    H = cfg['lstm_hidden_size']
    eps = cfg['eps']
    temp_cols = jnp.array(cfg['temperature_column'])
    ow = list(cfg['outside_walls'])
    nb1 = [a for a, _ in cfg['neighboring_rooms']]
    nb2 = [b for _, b in cfg['neighboring_rooms']]
    temp_cols_ow = jnp.array([cfg['temperature_column'][i] for i in ow])
    last_D = jnp.zeros((B, R), jnp.float32)
    last_E = jnp.zeros((B, R), jnp.float32)
    x = x.at[:, -1, temp_cols].set(last_D)
    d_emb = x[:, :, jnp.array(cfg['inputs_D'])]

    h = jnp.zeros((B, H), jnp.float32)
    c = jnp.zeros((B, H), jnp.float32)
    for t in range(T):
        e = jnp.maximum(d_emb[:, t, :] @ params['w_in'] + params['b_in'], 0.0)
        gates = e @ params['w_ih'] + h @ params['w_hh'] + params['b_lstm']
        i_g = jax.nn.sigmoid(gates[:, :H])
        f_g = jax.nn.sigmoid(gates[:, H:2 * H])
        g_g = jnp.tanh(gates[:, 2 * H:3 * H])
        o_g = jax.nn.sigmoid(gates[:, 3 * H:])
        c = f_g * c + i_g * g_g
        h = o_g * jnp.tanh(c)
    mean = h.mean(-1, keepdims=True)
    var = ((h - mean) ** 2).mean(-1, keepdims=True)
    ln = (h - mean) / jnp.sqrt(var + 1e-5) * params['ln_g'] + params['ln_b']
    temp = jnp.tanh(jnp.tanh(ln @ params['w_o1'] + params['b_o1']) @ params['w_o2']
                    + params['b_o2'])

    trange = jnp.array(cfg['temperature_range'], jnp.float32)
    tmin = jnp.array(cfg['temperature_min'], jnp.float32)
    iv = cfg['initial_values']
    D = temp / cfg['division_factor'] + x[:, -1, temp_cols]
    E = last_E
    b_term = ((x[:, -1, temp_cols_ow] + last_E[:, jnp.array(ow)] - 0.1) / 0.8
              * trange[jnp.array(ow)] + tmin[jnp.array(ow)]
              - x[:, -1, jnp.array([cfg['out_column']])]) \
        * jnp.exp(params['b_logw']) * jnp.array(iv['b'], jnp.float32)
    E = E.at[:, jnp.array(ow)].add(-b_term)
    arg1 = (x[:, -1, jnp.array(nb1)] + last_E[:, jnp.array(nb1)] - 0.1) / 0.8 \
        * trange[jnp.array(nb1)] + tmin[jnp.array(nb1)]
    arg2 = (x[:, -1, jnp.array(nb2)] + last_E[:, jnp.array(nb2)] - 0.1) / 0.8 \
        * trange[jnp.array(nb2)] + tmin[jnp.array(nb2)]
    effect = (arg1 - arg2) * jnp.exp(params['c_logw'])
    for i, (r1, r2) in enumerate(zip(nb1, nb2)):
        E = E.at[:, r1].add(-effect[:, i] * iv['c'][0][i])
        E = E.at[:, r2].add(effect[:, i] * iv['c'][1][i])
    power = x[:, -1, jnp.array(cfg['power_column'])]
    heating = jnp.any(power > eps, axis=1, keepdims=True)
    cooling = jnp.any(power < -eps, axis=1, keepdims=True)
    E = E + jnp.where(heating, jnp.where(power > eps, power, 0.0)
                      * jnp.exp(params['a_logw']) * jnp.array(iv['a'], jnp.float32), 0.0)
    E = E + jnp.where(cooling, jnp.where(power < -eps, power, 0.0)
                      * jnp.exp(params['d_logw']) * jnp.array(iv['d'], jnp.float32), 0.0)
    out = D + E
    out = jnp.where(x[:, -1, jnp.array([cfg['case_column']])] < eps, 0.0, out)
    return out, (h[None], c[None])


if __name__ == "__main__":
    key = jax.random.PRNGKey(0)
    k_x, k_p = jax.random.split(key)
    B, T, F = 4, 8, 10
    x = jax.random.normal(k_x, (B, T, F), dtype=jnp.float32)
    params = init_params(k_p, CFG)

    with jax.default_matmul_precision("highest"):
        out, (h, c) = s_pcnn_forward(x, params, CFG)
        jax.block_until_ready((out, h, c))
        ref_out, (ref_h, ref_c) = reference_forward(x, params, CFG)

    assert out.shape == (B, CFG['number_rooms'])
    assert h.shape == (1, B, CFG['lstm_hidden_size'])
    assert bool(jnp.all(jnp.isfinite(out)))
    assert bool(jnp.allclose(out, ref_out, rtol=2e-3, atol=2e-3)), (out, ref_out)
    assert bool(jnp.allclose(h, ref_h, rtol=2e-3, atol=2e-3))
    assert bool(jnp.allclose(c, ref_c, rtol=2e-3, atol=2e-3))
    print("KERNEL_OK")
</pallas_src>

<mosaic_0001>
module attributes {stable_mosaic.version = 11 : i64} {
  func.func @s_pcnn_kernel(%arg0: i32, %arg1: memref<8x8x9xf32, #tpu.memory_space<vmem>>, %arg2: memref<8x17xf32, #tpu.memory_space<vmem>>, %arg3: memref<8x128xf32, #tpu.memory_space<vmem>>, %arg4: memref<9x16xf32, #tpu.memory_space<vmem>>, %arg5: memref<16x128xf32, #tpu.memory_space<vmem>>, %arg6: memref<32x128xf32, #tpu.memory_space<vmem>>, %arg7: memref<32x16xf32, #tpu.memory_space<vmem>>, %arg8: memref<16x3xf32, #tpu.memory_space<vmem>>, %arg9: memref<8x128xf32, #tpu.memory_space<vmem>>, %arg10: memref<64x128xf32, #tpu.memory_space<vmem>>) attributes {dimension_semantics = [#tpu.dimension_semantics<parallel>], iteration_bounds = array<i64: 1>, scalar_prefetch = 0 : i64, scratch_operands = 1 : i64, tpu.core_type = #tpu.core_type<tc>, window_params = [{transform_indices = @transform_0, window_bounds = array<i64: 8, 8, 9>}, {transform_indices = @transform_1, window_bounds = array<i64: 8, 17>}, {pipeline_mode = #tpu.pipeline_mode<synchronous>, transform_indices = @transform_2, window_bounds = array<i64: 8, 128>}, {pipeline_mode = #tpu.pipeline_mode<synchronous>, transform_indices = @transform_3, window_bounds = array<i64: 9, 16>}, {pipeline_mode = #tpu.pipeline_mode<synchronous>, transform_indices = @transform_4, window_bounds = array<i64: 16, 128>}, {pipeline_mode = #tpu.pipeline_mode<synchronous>, transform_indices = @transform_5, window_bounds = array<i64: 32, 128>}, {pipeline_mode = #tpu.pipeline_mode<synchronous>, transform_indices = @transform_6, window_bounds = array<i64: 32, 16>}, {pipeline_mode = #tpu.pipeline_mode<synchronous>, transform_indices = @transform_7, window_bounds = array<i64: 16, 3>}, {transform_indices = @transform_8, window_bounds = array<i64: 8, 128>}]} {
    %c0 = arith.constant 0 : index
    %c0_0 = arith.constant 0 : index
    %c0_1 = arith.constant 0 : index
    %0 = vector.load %arg1[%c0, %c0_0, %c0_1] : memref<8x8x9xf32, #tpu.memory_space<vmem>>, vector<8x8x9xf32>
    %1 = vector.shape_cast %0 : vector<8x8x9xf32> to vector<64x9xf32>
    %c0_2 = arith.constant 0 : index
    %c0_3 = arith.constant 0 : index
    %2 = vector.load %arg3[%c0_2, %c0_3] : memref<8x128xf32, #tpu.memory_space<vmem>>, vector<1x16xf32>
    %c0_4 = arith.constant 0 : index
    %c0_5 = arith.constant 0 : index
    %3 = vector.load %arg4[%c0_4, %c0_5] : memref<9x16xf32, #tpu.memory_space<vmem>>, vector<9x16xf32>
    %cst = arith.constant dense<0.000000e+00> : vector<64x16xf32>
    %4 = tpu.matmul %1, %3, %cst {dimension_numbers = #tpu.dot_dimension_numbers<[1], [0], [0], [1], [0, 0, 1, 1], [], []>, precision = #tpu.contract_precision<fp32>} : vector<64x9xf32>, vector<9x16xf32>, vector<64x16xf32> -> vector<64x16xf32>
    %5 = vector.broadcast %2 : vector<1x16xf32> to vector<64x16xf32>
    %6 = arith.addf %4, %5 : vector<64x16xf32>
    %cst_6 = arith.constant 0.000000e+00 : f32
    %7 = vector.broadcast %cst_6 : f32 to vector<64x16xf32>
    %8 = arith.maximumf %6, %7 : vector<64x16xf32>
    %c1 = arith.constant 1 : index
    %c0_7 = arith.constant 0 : index
    %9 = vector.load %arg3[%c1, %c0_7] : memref<8x128xf32, #tpu.memory_space<vmem>>, vector<1x128xf32>
    %c0_8 = arith.constant 0 : index
    %c0_9 = arith.constant 0 : index
    %10 = vector.load %arg5[%c0_8, %c0_9] : memref<16x128xf32, #tpu.memory_space<vmem>>, vector<16x128xf32>
    %cst_10 = arith.constant dense<0.000000e+00> : vector<64x128xf32>
    %11 = tpu.matmul %8, %10, %cst_10 {dimension_numbers = #tpu.dot_dimension_numbers<[1], [0], [0], [1], [0, 0, 1, 1], [], []>, precision = #tpu.contract_precision<fp32>} : vector<64x16xf32>, vector<16x128xf32>, vector<64x128xf32> -> vector<64x128xf32>
    %12 = vector.broadcast %9 : vector<1x128xf32> to vector<64x128xf32>
    %13 = arith.addf %11, %12 : vector<64x128xf32>
    %c0_11 = arith.constant 0 : index
    %c0_12 = arith.constant 0 : index
    %14 = vector.load %arg10[%c0_11, %c0_12] : memref<64x128xf32, #tpu.memory_space<vmem>>, vector<64x128xf32>
    tpu.vector_store %arg10[%c0_11, %c0_12], %13 {strides = array<i32>} : memref<64x128xf32, #tpu.memory_space<vmem>>, vector<64x128xf32>,
    %c0_13 = arith.constant 0 : index
    %c0_14 = arith.constant 0 : index
    %15 = vector.load %arg6[%c0_13, %c0_14] : memref<32x128xf32, #tpu.memory_space<vmem>>, vector<32x128xf32>
    %cst_15 = arith.constant 0.000000e+00 : f32
    %16 = vector.broadcast %cst_15 : f32 to vector<8x32xf32>
    %cst_16 = arith.constant 0.000000e+00 : f32
    %17 = vector.broadcast %cst_16 : f32 to vector<8x32xf32>
    %c0_17 = arith.constant 0 : index
    %c0_18 = arith.constant 0 : index
    %18 = vector.load %arg10[%c0_17, %c0_18] : memref<64x128xf32, #tpu.memory_space<vmem>>, vector<8x128xf32>
    %cst_19 = arith.constant dense<0.000000e+00> : vector<8x128xf32>
    %19 = tpu.matmul %16, %15, %cst_19 {dimension_numbers = #tpu.dot_dimension_numbers<[1], [0], [0], [1], [0, 0, 1, 1], [], []>, precision = #tpu.contract_precision<fp32>} : vector<8x32xf32>, vector<32x128xf32>, vector<8x128xf32> -> vector<8x128xf32>
    %20 = arith.addf %18, %19 : vector<8x128xf32>
    %21 = math.tanh %20 : vector<8x128xf32>
    %22 = vector.extract_strided_slice %21 {offsets = [0, 0], sizes = [8, 32], strides = [1, 1]} : vector<8x128xf32> to vector<8x32xf32>
    %cst_20 = arith.constant 5.000000e-01 : f32
    %23 = vector.broadcast %cst_20 : f32 to vector<8x32xf32>
    %24 = arith.mulf %23, %22 : vector<8x32xf32>
    %cst_21 = arith.constant 5.000000e-01 : f32
    %25 = vector.broadcast %cst_21 : f32 to vector<8x32xf32>
    %26 = arith.addf %24, %25 : vector<8x32xf32>
    %27 = vector.extract_strided_slice %21 {offsets = [0, 32], sizes = [8, 32], strides = [1, 1]} : vector<8x128xf32> to vector<8x32xf32>
    %cst_22 = arith.constant 5.000000e-01 : f32
    %28 = vector.broadcast %cst_22 : f32 to vector<8x32xf32>
    %29 = arith.mulf %28, %27 : vector<8x32xf32>
    %cst_23 = arith.constant 5.000000e-01 : f32
    %30 = vector.broadcast %cst_23 : f32 to vector<8x32xf32>
    %31 = arith.addf %29, %30 : vector<8x32xf32>
    %32 = vector.extract_strided_slice %21 {offsets = [0, 64], sizes = [8, 32], strides = [1, 1]} : vector<8x128xf32> to vector<8x32xf32>
    %33 = vector.extract_strided_slice %21 {offsets = [0, 96], sizes = [8, 32], strides = [1, 1]} : vector<8x128xf32> to vector<8x32xf32>
    %cst_24 = arith.constant 5.000000e-01 : f32
    %34 = vector.broadcast %cst_24 : f32 to vector<8x32xf32>
    %35 = arith.mulf %34, %33 : vector<8x32xf32>
    %cst_25 = arith.constant 5.000000e-01 : f32
    %36 = vector.broadcast %cst_25 : f32 to vector<8x32xf32>
    %37 = arith.addf %35, %36 : vector<8x32xf32>
    %38 = arith.mulf %31, %17 : vector<8x32xf32>
    %39 = arith.mulf %26, %32 : vector<8x32xf32>
    %40 = arith.addf %38, %39 : vector<8x32xf32>
    %41 = math.tanh %40 : vector<8x32xf32>
    %42 = arith.mulf %37, %41 : vector<8x32xf32>
    %c8 = arith.constant 8 : index
    %c0_26 = arith.constant 0 : index
    %43 = vector.load %arg10[%c8, %c0_26] : memref<64x128xf32, #tpu.memory_space<vmem>>, vector<8x128xf32>
    %cst_27 = arith.constant dense<0.000000e+00> : vector<8x128xf32>
    %44 = tpu.matmul %42, %15, %cst_27 {dimension_numbers = #tpu.dot_dimension_numbers<[1], [0], [0], [1], [0, 0, 1, 1], [], []>, precision = #tpu.contract_precision<fp32>} : vector<8x32xf32>, vector<32x128xf32>, vector<8x128xf32> -> vector<8x128xf32>
    %45 = arith.addf %43, %44 : vector<8x128xf32>
    %46 = math.tanh %45 : vector<8x128xf32>
    %47 = vector.extract_strided_slice %46 {offsets = [0, 0], sizes = [8, 32], strides = [1, 1]} : vector<8x128xf32> to vector<8x32xf32>
    %cst_28 = arith.constant 5.000000e-01 : f32
    %48 = vector.broadcast %cst_28 : f32 to vector<8x32xf32>
    %49 = arith.mulf %48, %47 : vector<8x32xf32>
    %cst_29 = arith.constant 5.000000e-01 : f32
    %50 = vector.broadcast %cst_29 : f32 to vector<8x32xf32>
    %51 = arith.addf %49, %50 : vector<8x32xf32>
    %52 = vector.extract_strided_slice %46 {offsets = [0, 32], sizes = [8, 32], strides = [1, 1]} : vector<8x128xf32> to vector<8x32xf32>
    %cst_30 = arith.constant 5.000000e-01 : f32
    %53 = vector.broadcast %cst_30 : f32 to vector<8x32xf32>
    %54 = arith.mulf %53, %52 : vector<8x32xf32>
    %cst_31 = arith.constant 5.000000e-01 : f32
    %55 = vector.broadcast %cst_31 : f32 to vector<8x32xf32>
    %56 = arith.addf %54, %55 : vector<8x32xf32>
    %57 = vector.extract_strided_slice %46 {offsets = [0, 64], sizes = [8, 32], strides = [1, 1]} : vector<8x128xf32> to vector<8x32xf32>
    %58 = vector.extract_strided_slice %46 {offsets = [0, 96], sizes = [8, 32], strides = [1, 1]} : vector<8x128xf32> to vector<8x32xf32>
    %cst_32 = arith.constant 5.000000e-01 : f32
    %59 = vector.broadcast %cst_32 : f32 to vector<8x32xf32>
    %60 = arith.mulf %59, %58 : vector<8x32xf32>
    %cst_33 = arith.constant 5.000000e-01 : f32
    %61 = vector.broadcast %cst_33 : f32 to vector<8x32xf32>
    %62 = arith.addf %60, %61 : vector<8x32xf32>
    %63 = arith.mulf %56, %40 : vector<8x32xf32>
    %64 = arith.mulf %51, %57 : vector<8x32xf32>
    %65 = arith.addf %63, %64 : vector<8x32xf32>
    %66 = math.tanh %65 : vector<8x32xf32>
    %67 = arith.mulf %62, %66 : vector<8x32xf32>
    %c16 = arith.constant 16 : index
    %c0_34 = arith.constant 0 : index
    %68 = vector.load %arg10[%c16, %c0_34] : memref<64x128xf32, #tpu.memory_space<vmem>>, vector<8x128xf32>
    %cst_35 = arith.constant dense<0.000000e+00> : vector<8x128xf32>
    %69 = tpu.matmul %67, %15, %cst_35 {dimension_numbers = #tpu.dot_dimension_numbers<[1], [0], [0], [1], [0, 0, 1, 1], [], []>, precision = #tpu.contract_precision<fp32>} : vector<8x32xf32>, vector<32x128xf32>, vector<8x128xf32> -> vector<8x128xf32>
    %70 = arith.addf %68, %69 : vector<8x128xf32>
    %71 = math.tanh %70 : vector<8x128xf32>
    %72 = vector.extract_strided_slice %71 {offsets = [0, 0], sizes = [8, 32], strides = [1, 1]} : vector<8x128xf32> to vector<8x32xf32>
    %cst_36 = arith.constant 5.000000e-01 : f32
    %73 = vector.broadcast %cst_36 : f32 to vector<8x32xf32>
    %74 = arith.mulf %73, %72 : vector<8x32xf32>
    %cst_37 = arith.constant 5.000000e-01 : f32
    %75 = vector.broadcast %cst_37 : f32 to vector<8x32xf32>
    %76 = arith.addf %74, %75 : vector<8x32xf32>
    %77 = vector.extract_strided_slice %71 {offsets = [0, 32], sizes = [8, 32], strides = [1, 1]} : vector<8x128xf32> to vector<8x32xf32>
    %cst_38 = arith.constant 5.000000e-01 : f32
    %78 = vector.broadcast %cst_38 : f32 to vector<8x32xf32>
    %79 = arith.mulf %78, %77 : vector<8x32xf32>
    %cst_39 = arith.constant 5.000000e-01 : f32
    %80 = vector.broadcast %cst_39 : f32 to vector<8x32xf32>
    %81 = arith.addf %79, %80 : vector<8x32xf32>
    %82 = vector.extract_strided_slice %71 {offsets = [0, 64], sizes = [8, 32], strides = [1, 1]} : vector<8x128xf32> to vector<8x32xf32>
    %83 = vector.extract_strided_slice %71 {offsets = [0, 96], sizes = [8, 32], strides = [1, 1]} : vector<8x128xf32> to vector<8x32xf32>
    %cst_40 = arith.constant 5.000000e-01 : f32
    %84 = vector.broadcast %cst_40 : f32 to vector<8x32xf32>
    %85 = arith.mulf %84, %83 : vector<8x32xf32>
    %cst_41 = arith.constant 5.000000e-01 : f32
    %86 = vector.broadcast %cst_41 : f32 to vector<8x32xf32>
    %87 = arith.addf %85, %86 : vector<8x32xf32>
    %88 = arith.mulf %81, %65 : vector<8x32xf32>
    %89 = arith.mulf %76, %82 : vector<8x32xf32>
    %90 = arith.addf %88, %89 : vector<8x32xf32>
    %91 = math.tanh %90 : vector<8x32xf32>
    %92 = arith.mulf %87, %91 : vector<8x32xf32>
    %c24 = arith.constant 24 : index
    %c0_42 = arith.constant 0 : index
    %93 = vector.load %arg10[%c24, %c0_42] : memref<64x128xf32, #tpu.memory_space<vmem>>, vector<8x128xf32>
    %cst_43 = arith.constant dense<0.000000e+00> : vector<8x128xf32>
    %94 = tpu.matmul %92, %15, %cst_43 {dimension_numbers = #tpu.dot_dimension_numbers<[1], [0], [0], [1], [0, 0, 1, 1], [], []>, precision = #tpu.contract_precision<fp32>} : vector<8x32xf32>, vector<32x128xf32>, vector<8x128xf32> -> vector<8x128xf32>
    %95 = arith.addf %93, %94 : vector<8x128xf32>
    %96 = math.tanh %95 : vector<8x128xf32>
    %97 = vector.extract_strided_slice %96 {offsets = [0, 0], sizes = [8, 32], strides = [1, 1]} : vector<8x128xf32> to vector<8x32xf32>
    %cst_44 = arith.constant 5.000000e-01 : f32
    %98 = vector.broadcast %cst_44 : f32 to vector<8x32xf32>
    %99 = arith.mulf %98, %97 : vector<8x32xf32>
    %cst_45 = arith.constant 5.000000e-01 : f32
    %100 = vector.broadcast %cst_45 : f32 to vector<8x32xf32>
    %101 = arith.addf %99, %100 : vector<8x32xf32>
    %102 = vector.extract_strided_slice %96 {offsets = [0, 32], sizes = [8, 32], strides = [1, 1]} : vector<8x128xf32> to vector<8x32xf32>
    %cst_46 = arith.constant 5.000000e-01 : f32
    %103 = vector.broadcast %cst_46 : f32 to vector<8x32xf32>
    %104 = arith.mulf %103, %102 : vector<8x32xf32>
    %cst_47 = arith.constant 5.000000e-01 : f32
    %105 = vector.broadcast %cst_47 : f32 to vector<8x32xf32>
    %106 = arith.addf %104, %105 : vector<8x32xf32>
    %107 = vector.extract_strided_slice %96 {offsets = [0, 64], sizes = [8, 32], strides = [1, 1]} : vector<8x128xf32> to vector<8x32xf32>
    %108 = vector.extract_strided_slice %96 {offsets = [0, 96], sizes = [8, 32], strides = [1, 1]} : vector<8x128xf32> to vector<8x32xf32>
    %cst_48 = arith.constant 5.000000e-01 : f32
    %109 = vector.broadcast %cst_48 : f32 to vector<8x32xf32>
    %110 = arith.mulf %109, %108 : vector<8x32xf32>
    %cst_49 = arith.constant 5.000000e-01 : f32
    %111 = vector.broadcast %cst_49 : f32 to vector<8x32xf32>
    %112 = arith.addf %110, %111 : vector<8x32xf32>
    %113 = arith.mulf %106, %90 : vector<8x32xf32>
    %114 = arith.mulf %101, %107 : vector<8x32xf32>
    %115 = arith.addf %113, %114 : vector<8x32xf32>
    %116 = math.tanh %115 : vector<8x32xf32>
    %117 = arith.mulf %112, %116 : vector<8x32xf32>
    %c32 = arith.constant 32 : index
    %c0_50 = arith.constant 0 : index
    %118 = vector.load %arg10[%c32, %c0_50] : memref<64x128xf32, #tpu.memory_space<vmem>>, vector<8x128xf32>
    %cst_51 = arith.constant dense<0.000000e+00> : vector<8x128xf32>
    %119 = tpu.matmul %117, %15, %cst_51 {dimension_numbers = #tpu.dot_dimension_numbers<[1], [0], [0], [1], [0, 0, 1, 1], [], []>, precision = #tpu.contract_precision<fp32>} : vector<8x32xf32>, vector<32x128xf32>, vector<8x128xf32> -> vector<8x128xf32>
    %120 = arith.addf %118, %119 : vector<8x128xf32>
    %121 = math.tanh %120 : vector<8x128xf32>
    %122 = vector.extract_strided_slice %121 {offsets = [0, 0], sizes = [8, 32], strides = [1, 1]} : vector<8x128xf32> to vector<8x32xf32>
    %cst_52 = arith.constant 5.000000e-01 : f32
    %123 = vector.broadcast %cst_52 : f32 to vector<8x32xf32>
    %124 = arith.mulf %123, %122 : vector<8x32xf32>
    %cst_53 = arith.constant 5.000000e-01 : f32
    %125 = vector.broadcast %cst_53 : f32 to vector<8x32xf32>
    %126 = arith.addf %124, %125 : vector<8x32xf32>
    %127 = vector.extract_strided_slice %121 {offsets = [0, 32], sizes = [8, 32], strides = [1, 1]} : vector<8x128xf32> to vector<8x32xf32>
    %cst_54 = arith.constant 5.000000e-01 : f32
    %128 = vector.broadcast %cst_54 : f32 to vector<8x32xf32>
    %129 = arith.mulf %128, %127 : vector<8x32xf32>
    %cst_55 = arith.constant 5.000000e-01 : f32
    %130 = vector.broadcast %cst_55 : f32 to vector<8x32xf32>
    %131 = arith.addf %129, %130 : vector<8x32xf32>
    %132 = vector.extract_strided_slice %121 {offsets = [0, 64], sizes = [8, 32], strides = [1, 1]} : vector<8x128xf32> to vector<8x32xf32>
    %133 = vector.extract_strided_slice %121 {offsets = [0, 96], sizes = [8, 32], strides = [1, 1]} : vector<8x128xf32> to vector<8x32xf32>
    %cst_56 = arith.constant 5.000000e-01 : f32
    %134 = vector.broadcast %cst_56 : f32 to vector<8x32xf32>
    %135 = arith.mulf %134, %133 : vector<8x32xf32>
    %cst_57 = arith.constant 5.000000e-01 : f32
    %136 = vector.broadcast %cst_57 : f32 to vector<8x32xf32>
    %137 = arith.addf %135, %136 : vector<8x32xf32>
    %138 = arith.mulf %131, %115 : vector<8x32xf32>
    %139 = arith.mulf %126, %132 : vector<8x32xf32>
    %140 = arith.addf %138, %139 : vector<8x32xf32>
    %141 = math.tanh %140 : vector<8x32xf32>
    %142 = arith.mulf %137, %141 : vector<8x32xf32>
    %c40 = arith.constant 40 : index
    %c0_58 = arith.constant 0 : index
    %143 = vector.load %arg10[%c40, %c0_58] : memref<64x128xf32, #tpu.memory_space<vmem>>, vector<8x128xf32>
    %cst_59 = arith.constant dense<0.000000e+00> : vector<8x128xf32>
    %144 = tpu.matmul %142, %15, %cst_59 {dimension_numbers = #tpu.dot_dimension_numbers<[1], [0], [0], [1], [0, 0, 1, 1], [], []>, precision = #tpu.contract_precision<fp32>} : vector<8x32xf32>, vector<32x128xf32>, vector<8x128xf32> -> vector<8x128xf32>
    %145 = arith.addf %143, %144 : vector<8x128xf32>
    %146 = math.tanh %145 : vector<8x128xf32>
    %147 = vector.extract_strided_slice %146 {offsets = [0, 0], sizes = [8, 32], strides = [1, 1]} : vector<8x128xf32> to vector<8x32xf32>
    %cst_60 = arith.constant 5.000000e-01 : f32
    %148 = vector.broadcast %cst_60 : f32 to vector<8x32xf32>
    %149 = arith.mulf %148, %147 : vector<8x32xf32>
    %cst_61 = arith.constant 5.000000e-01 : f32
    %150 = vector.broadcast %cst_61 : f32 to vector<8x32xf32>
    %151 = arith.addf %149, %150 : vector<8x32xf32>
    %152 = vector.extract_strided_slice %146 {offsets = [0, 32], sizes = [8, 32], strides = [1, 1]} : vector<8x128xf32> to vector<8x32xf32>
    %cst_62 = arith.constant 5.000000e-01 : f32
    %153 = vector.broadcast %cst_62 : f32 to vector<8x32xf32>
    %154 = arith.mulf %153, %152 : vector<8x32xf32>
    %cst_63 = arith.constant 5.000000e-01 : f32
    %155 = vector.broadcast %cst_63 : f32 to vector<8x32xf32>
    %156 = arith.addf %154, %155 : vector<8x32xf32>
    %157 = vector.extract_strided_slice %146 {offsets = [0, 64], sizes = [8, 32], strides = [1, 1]} : vector<8x128xf32> to vector<8x32xf32>
    %158 = vector.extract_strided_slice %146 {offsets = [0, 96], sizes = [8, 32], strides = [1, 1]} : vector<8x128xf32> to vector<8x32xf32>
    %cst_64 = arith.constant 5.000000e-01 : f32
    %159 = vector.broadcast %cst_64 : f32 to vector<8x32xf32>
    %160 = arith.mulf %159, %158 : vector<8x32xf32>
    %cst_65 = arith.constant 5.000000e-01 : f32
    %161 = vector.broadcast %cst_65 : f32 to vector<8x32xf32>
    %162 = arith.addf %160, %161 : vector<8x32xf32>
    %163 = arith.mulf %156, %140 : vector<8x32xf32>
    %164 = arith.mulf %151, %157 : vector<8x32xf32>
    %165 = arith.addf %163, %164 : vector<8x32xf32>
    %166 = math.tanh %165 : vector<8x32xf32>
    %167 = arith.mulf %162, %166 : vector<8x32xf32>
    %c48 = arith.constant 48 : index
    %c0_66 = arith.constant 0 : index
    %168 = vector.load %arg10[%c48, %c0_66] : memref<64x128xf32, #tpu.memory_space<vmem>>, vector<8x128xf32>
    %cst_67 = arith.constant dense<0.000000e+00> : vector<8x128xf32>
    %169 = tpu.matmul %167, %15, %cst_67 {dimension_numbers = #tpu.dot_dimension_numbers<[1], [0], [0], [1], [0, 0, 1, 1], [], []>, precision = #tpu.contract_precision<fp32>} : vector<8x32xf32>, vector<32x128xf32>, vector<8x128xf32> -> vector<8x128xf32>
    %170 = arith.addf %168, %169 : vector<8x128xf32>
    %171 = math.tanh %170 : vector<8x128xf32>
    %172 = vector.extract_strided_slice %171 {offsets = [0, 0], sizes = [8, 32], strides = [1, 1]} : vector<8x128xf32> to vector<8x32xf32>
    %cst_68 = arith.constant 5.000000e-01 : f32
    %173 = vector.broadcast %cst_68 : f32 to vector<8x32xf32>
    %174 = arith.mulf %173, %172 : vector<8x32xf32>
    %cst_69 = arith.constant 5.000000e-01 : f32
    %175 = vector.broadcast %cst_69 : f32 to vector<8x32xf32>
    %176 = arith.addf %174, %175 : vector<8x32xf32>
    %177 = vector.extract_strided_slice %171 {offsets = [0, 32], sizes = [8, 32], strides = [1, 1]} : vector<8x128xf32> to vector<8x32xf32>
    %cst_70 = arith.constant 5.000000e-01 : f32
    %178 = vector.broadcast %cst_70 : f32 to vector<8x32xf32>
    %179 = arith.mulf %178, %177 : vector<8x32xf32>
    %cst_71 = arith.constant 5.000000e-01 : f32
    %180 = vector.broadcast %cst_71 : f32 to vector<8x32xf32>
    %181 = arith.addf %179, %180 : vector<8x32xf32>
    %182 = vector.extract_strided_slice %171 {offsets = [0, 64], sizes = [8, 32], strides = [1, 1]} : vector<8x128xf32> to vector<8x32xf32>
    %183 = vector.extract_strided_slice %171 {offsets = [0, 96], sizes = [8, 32], strides = [1, 1]} : vector<8x128xf32> to vector<8x32xf32>
    %cst_72 = arith.constant 5.000000e-01 : f32
    %184 = vector.broadcast %cst_72 : f32 to vector<8x32xf32>
    %185 = arith.mulf %184, %183 : vector<8x32xf32>
    %cst_73 = arith.constant 5.000000e-01 : f32
    %186 = vector.broadcast %cst_73 : f32 to vector<8x32xf32>
    %187 = arith.addf %185, %186 : vector<8x32xf32>
    %188 = arith.mulf %181, %165 : vector<8x32xf32>
    %189 = arith.mulf %176, %182 : vector<8x32xf32>
    %190 = arith.addf %188, %189 : vector<8x32xf32>
    %191 = math.tanh %190 : vector<8x32xf32>
    %192 = arith.mulf %187, %191 : vector<8x32xf32>
    %c56 = arith.constant 56 : index
    %c0_74 = arith.constant 0 : index
    %193 = vector.load %arg10[%c56, %c0_74] : memref<64x128xf32, #tpu.memory_space<vmem>>, vector<8x128xf32>
    %cst_75 = arith.constant dense<0.000000e+00> : vector<8x128xf32>
    %194 = tpu.matmul %192, %15, %cst_75 {dimension_numbers = #tpu.dot_dimension_numbers<[1], [0], [0], [1], [0, 0, 1, 1], [], []>, precision = #tpu.contract_precision<fp32>} : vector<8x32xf32>, vector<32x128xf32>, vector<8x128xf32> -> vector<8x128xf32>
    %195 = arith.addf %193, %194 : vector<8x128xf32>
    %196 = math.tanh %195 : vector<8x128xf32>
    %197 = vector.extract_strided_slice %196 {offsets = [0, 0], sizes = [8, 32], strides = [1, 1]} : vector<8x128xf32> to vector<8x32xf32>
    %cst_76 = arith.constant 5.000000e-01 : f32
    %198 = vector.broadcast %cst_76 : f32 to vector<8x32xf32>
    %199 = arith.mulf %198, %197 : vector<8x32xf32>
    %cst_77 = arith.constant 5.000000e-01 : f32
    %200 = vector.broadcast %cst_77 : f32 to vector<8x32xf32>
    %201 = arith.addf %199, %200 : vector<8x32xf32>
    %202 = vector.extract_strided_slice %196 {offsets = [0, 32], sizes = [8, 32], strides = [1, 1]} : vector<8x128xf32> to vector<8x32xf32>
    %cst_78 = arith.constant 5.000000e-01 : f32
    %203 = vector.broadcast %cst_78 : f32 to vector<8x32xf32>
    %204 = arith.mulf %203, %202 : vector<8x32xf32>
    %cst_79 = arith.constant 5.000000e-01 : f32
    %205 = vector.broadcast %cst_79 : f32 to vector<8x32xf32>
    %206 = arith.addf %204, %205 : vector<8x32xf32>
    %207 = vector.extract_strided_slice %196 {offsets = [0, 64], sizes = [8, 32], strides = [1, 1]} : vector<8x128xf32> to vector<8x32xf32>
    %208 = vector.extract_strided_slice %196 {offsets = [0, 96], sizes = [8, 32], strides = [1, 1]} : vector<8x128xf32> to vector<8x32xf32>
    %cst_80 = arith.constant 5.000000e-01 : f32
    %209 = vector.broadcast %cst_80 : f32 to vector<8x32xf32>
    %210 = arith.mulf %209, %208 : vector<8x32xf32>
    %cst_81 = arith.constant 5.000000e-01 : f32
    %211 = vector.broadcast %cst_81 : f32 to vector<8x32xf32>
    %212 = arith.addf %210, %211 : vector<8x32xf32>
    %213 = arith.mulf %206, %190 : vector<8x32xf32>
    %214 = arith.mulf %201, %207 : vector<8x32xf32>
    %215 = arith.addf %213, %214 : vector<8x32xf32>
    %216 = math.tanh %215 : vector<8x32xf32>
    %217 = arith.mulf %212, %216 : vector<8x32xf32>
    %cst_82 = arith.constant dense<0.000000e+00> : vector<8xf32>
    %218 = vector.multi_reduction <add>, %217, %cst_82 [1] : vector<8x32xf32> to vector<8xf32>
    %219 = vector.shape_cast %218 : vector<8xf32> to vector<8x1xf32>
    %cst_83 = arith.constant 3.200000e+01 : f32
    %220 = vector.broadcast %cst_83 : f32 to vector<8x1xf32>
    %221 = arith.divf %219, %220 : vector<8x1xf32>
    %222 = vector.broadcast %221 : vector<8x1xf32> to vector<8x32xf32>
    %223 = arith.subf %217, %222 : vector<8x32xf32>
    %224 = arith.mulf %223, %223 : vector<8x32xf32>
    %cst_84 = arith.constant dense<0.000000e+00> : vector<8xf32>
    %225 = vector.multi_reduction <add>, %224, %cst_84 [1] : vector<8x32xf32> to vector<8xf32>
    %226 = vector.shape_cast %225 : vector<8xf32> to vector<8x1xf32>
    %cst_85 = arith.constant 3.200000e+01 : f32
    %227 = vector.broadcast %cst_85 : f32 to vector<8x1xf32>
    %228 = arith.divf %226, %227 : vector<8x1xf32>
    %229 = vector.broadcast %221 : vector<8x1xf32> to vector<8x32xf32>
    %230 = arith.subf %217, %229 : vector<8x32xf32>
    %cst_86 = arith.constant 9.99999974E-6 : f32
    %231 = vector.broadcast %cst_86 : f32 to vector<8x1xf32>
    %232 = arith.addf %228, %231 : vector<8x1xf32>
    %233 = math.rsqrt %232 : vector<8x1xf32>
    %234 = vector.broadcast %233 : vector<8x1xf32> to vector<8x32xf32>
    %235 = arith.mulf %230, %234 : vector<8x32xf32>
    %c2 = arith.constant 2 : index
    %c0_87 = arith.constant 0 : index
    %236 = vector.load %arg3[%c2, %c0_87] : memref<8x128xf32, #tpu.memory_space<vmem>>, vector<1x32xf32>
    %237 = vector.broadcast %236 : vector<1x32xf32> to vector<8x32xf32>
    %238 = arith.mulf %235, %237 : vector<8x32xf32>
    %c3 = arith.constant 3 : index
    %c0_88 = arith.constant 0 : index
    %239 = vector.load %arg3[%c3, %c0_88] : memref<8x128xf32, #tpu.memory_space<vmem>>, vector<1x32xf32>
    %240 = vector.broadcast %239 : vector<1x32xf32> to vector<8x32xf32>
    %241 = arith.addf %238, %240 : vector<8x32xf32>
    %c0_89 = arith.constant 0 : index
    %c0_90 = arith.constant 0 : index
    %242 = vector.load %arg7[%c0_89, %c0_90] : memref<32x16xf32, #tpu.memory_space<vmem>>, vector<32x16xf32>
    %cst_91 = arith.constant dense<0.000000e+00> : vector<8x16xf32>
    %243 = tpu.matmul %241, %242, %cst_91 {dimension_numbers = #tpu.dot_dimension_numbers<[1], [0], [0], [1], [0, 0, 1, 1], [], []>, precision = #tpu.contract_precision<fp32>} : vector<8x32xf32>, vector<32x16xf32>, vector<8x16xf32> -> vector<8x16xf32>
    %c4 = arith.constant 4 : index
    %c0_92 = arith.constant 0 : index
    %244 = vector.load %arg3[%c4, %c0_92] : memref<8x128xf32, #tpu.memory_space<vmem>>, vector<1x16xf32>
    %245 = vector.broadcast %244 : vector<1x16xf32> to vector<8x16xf32>
    %246 = arith.addf %243, %245 : vector<8x16xf32>
    %247 = math.tanh %246 : vector<8x16xf32>
    %c0_93 = arith.constant 0 : index
    %c0_94 = arith.constant 0 : index
    %248 = vector.load %arg8[%c0_93, %c0_94] : memref<16x3xf32, #tpu.memory_space<vmem>>, vector<16x3xf32>
    %cst_95 = arith.constant dense<0.000000e+00> : vector<8x3xf32>
    %249 = tpu.matmul %247, %248, %cst_95 {dimension_numbers = #tpu.dot_dimension_numbers<[1], [0], [0], [1], [0, 0, 1, 1], [], []>, precision = #tpu.contract_precision<fp32>} : vector<8x16xf32>, vector<16x3xf32>, vector<8x3xf32> -> vector<8x3xf32>
    %c5 = arith.constant 5 : index
    %c0_96 = arith.constant 0 : index
    %250 = vector.load %arg3[%c5, %c0_96] : memref<8x128xf32, #tpu.memory_space<vmem>>, vector<1x3xf32>
    %251 = vector.broadcast %250 : vector<1x3xf32> to vector<8x3xf32>
    %252 = arith.addf %249, %251 : vector<8x3xf32>
    %253 = math.tanh %252 : vector<8x3xf32>
    %c0_97 = arith.constant 0 : index
    %c0_98 = arith.constant 0 : index
    %254 = vector.load %arg2[%c0_97, %c0_98] : memref<8x17xf32, #tpu.memory_space<vmem>>, vector<8x17xf32>
    %255 = vector.extract_strided_slice %254 {offsets = [0, 0], sizes = [8, 3], strides = [1, 1]} : vector<8x17xf32> to vector<8x3xf32>
    %256 = vector.extract_strided_slice %254 {offsets = [0, 3], sizes = [8, 2], strides = [1, 1]} : vector<8x17xf32> to vector<8x2xf32>
    %257 = vector.extract_strided_slice %254 {offsets = [0, 5], sizes = [8, 2], strides = [1, 1]} : vector<8x17xf32> to vector<8x2xf32>
    %258 = vector.extract_strided_slice %254 {offsets = [0, 7], sizes = [8, 2], strides = [1, 1]} : vector<8x17xf32> to vector<8x2xf32>
    %259 = vector.extract_strided_slice %254 {offsets = [0, 9], sizes = [8, 1], strides = [1, 1]} : vector<8x17xf32> to vector<8x1xf32>
    %260 = vector.extract_strided_slice %254 {offsets = [0, 10], sizes = [8, 3], strides = [1, 1]} : vector<8x17xf32> to vector<8x3xf32>
    %261 = vector.extract_strided_slice %254 {offsets = [0, 13], sizes = [8, 1], strides = [1, 1]} : vector<8x17xf32> to vector<8x1xf32>
    %262 = vector.extract_strided_slice %254 {offsets = [0, 14], sizes = [8, 3], strides = [1, 1]} : vector<8x17xf32> to vector<8x3xf32>
    %c6 = arith.constant 6 : index
    %c0_99 = arith.constant 0 : index
    %263 = vector.load %arg3[%c6, %c0_99] : memref<8x128xf32, #tpu.memory_space<vmem>>, vector<1x3xf32>
    %c6_100 = arith.constant 6 : index
    %c3_101 = arith.constant 3 : index
    %264 = vector.load %arg3[%c6_100, %c3_101] : memref<8x128xf32, #tpu.memory_space<vmem>>, vector<1x3xf32>
    %c6_102 = arith.constant 6 : index
    %c6_103 = arith.constant 6 : index
    %265 = vector.load %arg3[%c6_102, %c6_103] : memref<8x128xf32, #tpu.memory_space<vmem>>, vector<1x2xf32>
    %c6_104 = arith.constant 6 : index
    %c8_105 = arith.constant 8 : index
    %266 = vector.load %arg3[%c6_104, %c8_105] : memref<8x128xf32, #tpu.memory_space<vmem>>, vector<1x2xf32>
    %c6_106 = arith.constant 6 : index
    %c10 = arith.constant 10 : index
    %267 = vector.load %arg3[%c6_106, %c10] : memref<8x128xf32, #tpu.memory_space<vmem>>, vector<1x2xf32>
    %cst_107 = arith.constant 1.000000e-01 : f32
    %268 = vector.broadcast %cst_107 : f32 to vector<8x3xf32>
    %269 = arith.mulf %253, %268 : vector<8x3xf32>
    %270 = arith.addf %269, %255 : vector<8x3xf32>
    %271 = vector.broadcast %259 : vector<8x1xf32> to vector<8x2xf32>
    %272 = arith.subf %256, %271 : vector<8x2xf32>
    %273 = vector.broadcast %265 : vector<1x2xf32> to vector<8x2xf32>
    %274 = arith.mulf %272, %273 : vector<8x2xf32>
    %275 = arith.subf %257, %258 : vector<8x2xf32>
    %276 = vector.broadcast %266 : vector<1x2xf32> to vector<8x2xf32>
    %277 = arith.mulf %275, %276 : vector<8x2xf32>
    %278 = vector.broadcast %267 : vector<1x2xf32> to vector<8x2xf32>
    %279 = arith.mulf %275, %278 : vector<8x2xf32>
    %cst_108 = arith.constant 0.000000e+00 : f32
    %280 = vector.broadcast %cst_108 : f32 to vector<8x1xf32>
    %281 = vector.extract_strided_slice %274 {offsets = [0, 0], sizes = [8, 1], strides = [1, 1]} : vector<8x2xf32> to vector<8x1xf32>
    %282 = arith.subf %280, %281 : vector<8x1xf32>
    %283 = vector.extract_strided_slice %277 {offsets = [0, 0], sizes = [8, 1], strides = [1, 1]} : vector<8x2xf32> to vector<8x1xf32>
    %284 = arith.subf %282, %283 : vector<8x1xf32>
    %cst_109 = arith.constant 0.000000e+00 : f32
    %285 = vector.broadcast %cst_109 : f32 to vector<8x1xf32>
    %286 = vector.extract_strided_slice %279 {offsets = [0, 0], sizes = [8, 1], strides = [1, 1]} : vector<8x2xf32> to vector<8x1xf32>
    %287 = arith.addf %285, %286 : vector<8x1xf32>
    %288 = vector.extract_strided_slice %277 {offsets = [0, 1], sizes = [8, 1], strides = [1, 1]} : vector<8x2xf32> to vector<8x1xf32>
    %289 = arith.subf %287, %288 : vector<8x1xf32>
    %cst_110 = arith.constant 0.000000e+00 : f32
    %290 = vector.broadcast %cst_110 : f32 to vector<8x1xf32>
    %291 = vector.extract_strided_slice %274 {offsets = [0, 1], sizes = [8, 1], strides = [1, 1]} : vector<8x2xf32> to vector<8x1xf32>
    %292 = arith.subf %290, %291 : vector<8x1xf32>
    %293 = vector.extract_strided_slice %279 {offsets = [0, 1], sizes = [8, 1], strides = [1, 1]} : vector<8x2xf32> to vector<8x1xf32>
    %294 = arith.addf %292, %293 : vector<8x1xf32>
    %295 = tpu.concatenate %284, %289, %294 in 1 : vector<8x1xf32>, vector<8x1xf32>, vector<8x1xf32> -> vector<8x3xf32>
    %296 = arith.addf %262, %295 : vector<8x3xf32>
    %cst_111 = arith.constant dense<0xFF800000> : vector<8xf32>
    %297 = vector.multi_reduction <maximumf>, %260, %cst_111 [1] : vector<8x3xf32> to vector<8xf32>
    %298 = vector.shape_cast %297 : vector<8xf32> to vector<8x1xf32>
    %cst_112 = arith.constant 9.99999997E-7 : f32
    %299 = vector.broadcast %cst_112 : f32 to vector<8x1xf32>
    %300 = arith.cmpf ogt, %298, %299 : vector<8x1xf32>
    %cst_113 = arith.constant dense<0x7F800000> : vector<8xf32>
    %301 = vector.multi_reduction <minimumf>, %260, %cst_113 [1] : vector<8x3xf32> to vector<8xf32>
    %302 = vector.shape_cast %301 : vector<8xf32> to vector<8x1xf32>
    %cst_114 = arith.constant -9.99999997E-7 : f32
    %303 = vector.broadcast %cst_114 : f32 to vector<8x1xf32>
    %304 = arith.cmpf olt, %302, %303 : vector<8x1xf32>
    %cst_115 = arith.constant 9.99999997E-7 : f32
    %305 = vector.broadcast %cst_115 : f32 to vector<8x3xf32>
    %306 = arith.cmpf ogt, %260, %305 : vector<8x3xf32>
    %cst_116 = arith.constant 0.000000e+00 : f32
    %307 = vector.broadcast %cst_116 : f32 to vector<8x3xf32>
    %308 = arith.select %306, %260, %307 : vector<8x3xi1>, vector<8x3xf32>
    %309 = vector.broadcast %263 : vector<1x3xf32> to vector<8x3xf32>
    %310 = arith.mulf %308, %309 : vector<8x3xf32>
    %cst_117 = arith.constant 0.000000e+00 : f32
    %311 = vector.shape_cast %300 : vector<8x1xi1> to vector<8x1xi1>
    %312 = vector.broadcast %311 : vector<8x1xi1> to vector<8x3xi1>
    %313 = vector.broadcast %cst_117 : f32 to vector<8x3xf32>
    %314 = arith.select %312, %310, %313 : vector<8x3xi1>, vector<8x3xf32>
    %315 = arith.addf %296, %314 : vector<8x3xf32>
    %cst_118 = arith.constant -9.99999997E-7 : f32
    %316 = vector.broadcast %cst_118 : f32 to vector<8x3xf32>
    %317 = arith.cmpf olt, %260, %316 : vector<8x3xf32>
    %cst_119 = arith.constant 0.000000e+00 : f32
    %318 = vector.broadcast %cst_119 : f32 to vector<8x3xf32>
    %319 = arith.select %317, %260, %318 : vector<8x3xi1>, vector<8x3xf32>
    %320 = vector.broadcast %264 : vector<1x3xf32> to vector<8x3xf32>
    %321 = arith.mulf %319, %320 : vector<8x3xf32>
    %cst_120 = arith.constant 0.000000e+00 : f32
    %322 = vector.shape_cast %304 : vector<8x1xi1> to vector<8x1xi1>
    %323 = vector.broadcast %322 : vector<8x1xi1> to vector<8x3xi1>
    %324 = vector.broadcast %cst_120 : f32 to vector<8x3xf32>
    %325 = arith.select %323, %321, %324 : vector<8x3xi1>, vector<8x3xf32>
    %326 = arith.addf %315, %325 : vector<8x3xf32>
    %327 = arith.addf %270, %326 : vector<8x3xf32>
    %cst_121 = arith.constant 9.99999997E-7 : f32
    %328 = vector.broadcast %cst_121 : f32 to vector<8x1xf32>
    %329 = arith.cmpf olt, %261, %328 : vector<8x1xf32>
    %cst_122 = arith.constant 0.000000e+00 : f32
    %330 = vector.shape_cast %329 : vector<8x1xi1> to vector<8x1xi1>
    %331 = vector.broadcast %330 : vector<8x1xi1> to vector<8x3xi1>
    %332 = vector.broadcast %cst_122 : f32 to vector<8x3xf32>
    %333 = arith.select %331, %332, %327 : vector<8x3xi1>, vector<8x3xf32>
    %cst_123 = arith.constant 0.000000e+00 : f32
    %334 = vector.broadcast %cst_123 : f32 to vector<8x61xf32>
    %335 = tpu.concatenate %217, %215, %333, %334 in 1 : vector<8x32xf32>, vector<8x32xf32>, vector<8x3xf32>, vector<8x61xf32> -> vector<8x128xf32>
    %c0_124 = arith.constant 0 : index
    %c0_125 = arith.constant 0 : index
    %336 = vector.load %arg9[%c0_124, %c0_125] : memref<8x128xf32, #tpu.memory_space<vmem>>, vector<8x128xf32>
    tpu.vector_store %arg9[%c0_124, %c0_125], %335 {strides = array<i32>} : memref<8x128xf32, #tpu.memory_space<vmem>>, vector<8x128xf32>,
    return
  }
  func.func @transform_0(%arg0: i32) -> (i32, i32, i32) {
    %c0_i32 = arith.constant 0 : i32
    %c0_i32_0 = arith.constant 0 : i32
    %c0_i32_1 = arith.constant 0 : i32
    return %c0_i32, %arg0, %c0_i32_0 : i32, i32, i32
  }
  func.func @transform_1(%arg0: i32) -> (i32, i32) {
    %c0_i32 = arith.constant 0 : i32
    %c0_i32_0 = arith.constant 0 : i32
    return %arg0, %c0_i32 : i32, i32
  }
  func.func @transform_2(%arg0: i32) -> (i32, i32) {
    %c0_i32 = arith.constant 0 : i32
    %c0_i32_0 = arith.constant 0 : i32
    %c0_i32_1 = arith.constant 0 : i32
    return %c0_i32, %c0_i32_0 : i32, i32
  }
  func.func @transform_3(%arg0: i32) -> (i32, i32) {
    %c0_i32 = arith.constant 0 : i32
    %c0_i32_0 = arith.constant 0 : i32
    %c0_i32_1 = arith.constant 0 : i32
    return %c0_i32, %c0_i32_0 : i32, i32
  }
  func.func @transform_4(%arg0: i32) -> (i32, i32) {
    %c0_i32 = arith.constant 0 : i32
    %c0_i32_0 = arith.constant 0 : i32
    %c0_i32_1 = arith.constant 0 : i32
    return %c0_i32, %c0_i32_0 : i32, i32
  }
  func.func @transform_5(%arg0: i32) -> (i32, i32) {
    %c0_i32 = arith.constant 0 : i32
    %c0_i32_0 = arith.constant 0 : i32
    %c0_i32_1 = arith.constant 0 : i32
    return %c0_i32, %c0_i32_0 : i32, i32
  }
  func.func @transform_6(%arg0: i32) -> (i32, i32) {
    %c0_i32 = arith.constant 0 : i32
    %c0_i32_0 = arith.constant 0 : i32
    %c0_i32_1 = arith.constant 0 : i32
    return %c0_i32, %c0_i32_0 : i32, i32
  }
  func.func @transform_7(%arg0: i32) -> (i32, i32) {
    %c0_i32 = arith.constant 0 : i32
    %c0_i32_0 = arith.constant 0 : i32
    %c0_i32_1 = arith.constant 0 : i32
    return %c0_i32, %c0_i32_0 : i32, i32
  }
  func.func @transform_8(%arg0: i32) -> (i32, i32) {
    %c0_i32 = arith.constant 0 : i32
    %c0_i32_0 = arith.constant 0 : i32
    return %arg0, %c0_i32 : i32, i32
  }
}

</mosaic_0001>

<bundles_post_ra>
// kernel: tpu_custom_call.1
= control target key start
LH: loop header
LB: loop body
LE: loop exit
PB: predicated region body
PF: predicated region fallthrough
CT: control target
= control target key end

     0   :  { %13 = vsyncpa [#allocation4], 0  ;;  %s3988_s0 = inlined_call_operand.hbm [shape: f32[8,8,9], index: 0, kind: input, shape index: {}]   ;;  %s3989_s1 = inlined_call_operand.hbm [shape: f32[8,17], index: 1, kind: input, shape index: {}]   ;;  %s3990_s2 = inlined_call_operand.hbm [shape: f32[8,128], index: 2, kind: input, shape index: {}]   ;;  %s3991_s3 = inlined_call_operand.vmem [shape: f32[9,16], index: 3, kind: input, shape index: {}]   ;;  %s3992_s4 = inlined_call_operand.hbm [shape: f32[16,128], index: 4, kind: input, shape index: {}]   ;;  %s3993_s5 = inlined_call_operand.vmem [shape: f32[32,128], index: 5, kind: input, shape index: {}]   ;;  %s3994_s6 = inlined_call_operand.vmem [shape: f32[32,16], index: 6, kind: input, shape index: {}]   ;;  %s3995_s7 = inlined_call_operand.vmem [shape: f32[16,3], index: 7, kind: input, shape index: {}]   ;;  %s3996_s8 = inlined_call_operand.hbm [shape: f32[8,128], index: 8, kind: output, shape index: {}]  }
   0x1   :  { %14 = vsyncpa [#allocation7], 0 }
   0x2   :  { %15 = vsyncpa [#allocation10], 0  ;;  %s35_s29 = sshll.u32 %s3989_s1, 4  ;;  %s36_s29 = int_to_ptr.hbm [resolvable:$true] %s35_s29 }
   0x3   :  { %16 = vsyncpa [#allocation5], 0  ;;  %s3383_s30 = smov [#allocation6]   ;;  %s21_s12 = sshll.u32 %s3988_s0, 4  ;;  %s22_s12 = int_to_ptr.hbm [resolvable:$true] %s21_s12 }
   0x4   :  { %s37_s9 = sshll.u32 %s3383_s30, 4  ;;  %s3384_s13 = smov [#allocation3]   ;;  %s38_s9 = int_to_ptr.vmem [resolvable:$true] %s37_s9 }
   0x5   :  { %40 = dma.hbm_to_vmem [thread:$0]  %s36_s29, 128, %s38_s9, [#allocation7]  }
   0x6   :  { %s23_s14 = sshll.u32 %s3384_s13, 4  ;;  %s3385_s15 = smov 128   ;;  %s24_s14 = int_to_ptr.vmem [resolvable:$true] %s23_s14 }
   0x7   :  { %s3386_s16 = smov 8   ;;  %s46_s1 = sshll.u32 %s3990_s2, 4  ;;  %s47_s1 = int_to_ptr.hbm [resolvable:$true] %s46_s1 }
   0x8   :  { %29 = dma.hbm_to_vmem [thread:$0]  %s22_s12, 1024, %s24_s14, [#allocation4], %s3385_s15, %s3385_s15, %s3386_s16  }
   0x9   :  { %s3387_s19 = smov [#allocation8]   ;;  %s58_s0 = sshll.u32 %s3992_s4, 4  ;;  %s59_s0 = int_to_ptr.hbm [resolvable:$true] %s58_s0 }
   0xa   :  { %s48_s20 = sshll.u32 %s3387_s19, 4  ;;  %s3388_s23 = smov [#allocation9]   ;;  %s49_s20 = int_to_ptr.vmem [resolvable:$true] %s48_s20 }
   0xb   :  { %51 = dma.hbm_to_vmem [thread:$0]  %s47_s1, 128, %s49_s20, [#allocation7]  }
   0xc   :  { %s60_s24 = sshll.u32 %s3388_s23, 4  ;;  %s61_s24 = int_to_ptr.vmem [resolvable:$true] %s60_s24 }
   0xd   :  { %66 = dma.hbm_to_vmem [thread:$0]  %s59_s0, 256, %s61_s24, [#allocation10], %s3385_s15, %s3385_s15, %s3386_s16  }
   0xe   :  { %3375 = dma.done.wait [#allocation4], 1024  }
   0xf   :  { %3376 = vsyncadd [#allocation4], 4294966272 }
  0x10   :  { %3377 = dma.done.wait [#allocation7], 256  }
  0x11   :  { %3378 = vsyncadd [#allocation7], 4294967040 }
  0x12   :  { %3379 = dma.done.wait [#allocation10], 256  }
  0x13   :  { %3380 = vsyncadd [#allocation10], 4294967040  ;;  %vm126_vm0 = vcmask 1040384   ;;  %vm101_vm1 = vcmask 72704   ;;  %v99_v0 = vld [vmem:[%s3991_s3 + $0x8] sm:$0x1] }
  0x14   :  { %v98_v1 = vld [vmem:[%s3991_s3] sm:$0xff]  ;;  %v128_v3 = vsel %vm126_vm0, %v99_v0, 0  ;;  %v90_v6 = vld [vmem:[#allocation3 + $0x8] sm:$0xff]  ;;  %v91_v10 = vld [vmem:[#allocation3 + $0x10] sm:$0xff]  ;;  %vm518_vm2 = vcmask 130048   ;;  %s3391_s12 = smov 32  }
  0x15   :  { %v89_v2 = vld [vmem:[#allocation3] sm:$0xff]  ;;  %v146_v4 = vand.u32 4294901760, %v98_v1  ;;  %v144_v7 = vand.u32 4294901760, %v128_v3  ;;  %v106_v9 = vsel %vm101_vm1, %v90_v6, 0  ;;  %v109_v17 = vsel %vm101_vm1, %v91_v10, 0  ;;  %v92_v28 = vld [vmem:[#allocation3 + $0x18] sm:$0xff] }
  0x16   :  { %v103_v5 = vsel %vm101_vm1, %v89_v2, 0  ;;  %v3475_v12 = vand.u32 4294901760, %v106_v9  ;;  %v3480_v24 = vand.u32 4294901760, %v109_v17  ;;  %v112_v31 = vsel %vm101_vm1, %v92_v28, 0  ;;  %v93_v35 = vld [vmem:[#allocation3 + $0x20] sm:$0xff]  ;;  %v94_v42 = vld [vmem:[#allocation3 + $0x28] sm:$0xff] }
  0x17   :  { %v3472_v8 = vand.u32 4294901760, %v103_v5  ;;  %v234_v11 = vsub.f32 %v98_v1, %v146_v4  ;;  %v228_v13 = vsub.f32 %v128_v3, %v144_v7  ;;  %145 = vmatpush.msra.mxu0 %v144_v7  ;;  %348 = vmatpush.msra.mxu3 %v144_v7  ;;  %v3485_v34 = vand.u32 4294901760, %v112_v31  ;;  %v95_v49 = vld [vmem:[#allocation3 + $0x30] sm:$0xff]  ;;  %v96_v56 = vld [vmem:[#allocation3 + $0x38] sm:$0xff]  ;;  %s3393_s13 = smov 96   ;;  %s3395_s14 = smov 125  }
  0x18   :  { %v157_v16 = vsub.f32 %v106_v9, %v3475_v12  ;;  %v165_v30 = vsub.f32 %v109_v17, %v3480_v24  ;;  %v115_v38 = vsel %vm101_vm1, %v93_v35, 0  ;;  %v118_v45 = vsel %vm101_vm1, %v94_v42, 0  ;;  %v515_v17 = vld [vmem:[#allocation9] sm:$0xff]  ;;  %s3396_s1 = smov 126   ;;  %s3397_s19 = smov 123  }
  0x19   :  { %v149_v14 = vsub.f32 %v103_v5, %v3472_v8  ;;  %v235_v15 = vand.u32 4294901760, %v234_v11  ;;  %288 = vmatpush.msra.mxu2 %v228_v13  ;;  %147 = vmatpush.msra.mxu0 %v146_v4  ;;  %v229_v19 = vand.u32 4294901760, %v228_v13  ;;  %v173_v37 = vsub.f32 %v112_v31, %v3485_v34  ;;  %v516_v5 = vld [vmem:[#allocation9 + $0x8] sm:$0xff]  ;;  %v3509_v31 = vld [vmem:[#allocation8] ss:$0 sm:$0xff]  ;;  %s3400_s26 = smov 10  }
  0x1a   :  { %350 = vmatpush.msra.mxu3 %v146_v4  ;;  %v158_v23 = vand.u32 4294901760, %v157_v16  ;;  %v166_v33 = vand.u32 4294901760, %v165_v30  ;;  %v180_v41 = vand.u32 4294901760, %v115_v38  ;;  %v188_v48 = vand.u32 4294901760, %v118_v45  ;;  %s3401_s4 = smov 7   ;;  %s3402_s3 = smov 14  }
  0x1b   :  { %v150_v18 = vand.u32 4294901760, %v149_v14  ;;  %v236_v20 = vsub.f32 %v234_v11, %v235_v15  ;;  %291 = vmatpush.msra.mxu2 %v234_v11  ;;  %v230_v22 = vsub.f32 %v228_v13, %v229_v19  ;;  %417 = vmatpush.msrb.mxu0 %v229_v19  ;;  %v174_v40 = vand.u32 4294901760, %v173_v37  ;;  %s3403_s27 = smov 4   ;;  %s3406_s28 = smov 114  }
  0x1c   :  { %294 = vmatmul.f32.vlgmr.msra.gmra.mxu2 %v149_v14  ;;  %v159_v29 = vsub.f32 %v157_v16, %v158_v23  ;;  %v167_v36 = vsub.f32 %v165_v30, %v166_v33  ;;  %v181_v44 = vsub.f32 %v115_v38, %v180_v41  ;;  %v189_v51 = vsub.f32 %v118_v45, %v188_v48  ;;  %s3407_s29 = smov [#allocation11]   ;;  %s3169_s11 = sshll.u32 %s3996_s8, 4  ;;  %s3170_s11 = int_to_ptr.hbm [resolvable:$true] %s3169_s11 }
  0x1d   :  { %v151_v21 = vsub.f32 %v149_v14, %v150_v18  ;;  %354 = vmatmul.f32.vlgmr.msra.gmra.mxu3 %v150_v18  ;;  %v231_v26 = vand.u32 4294901760, %v230_v22  ;;  %v237_v27 = vand.u32 4294901760, %v236_v20  ;;  %421 = vmatpush.msrb.mxu0 %v235_v15  ;;  %v175_v43 = vsub.f32 %v173_v37, %v174_v40  ;;  %s3167_s30 = sshll.u32 %s3407_s29, 4  ;;  %s3168_s30 = int_to_ptr.vmem [resolvable:$true] %s3167_s30 }
  0x1e   :  { %v160_v32 = vand.u32 4294901760, %v159_v29  ;;  %v168_v39 = vand.u32 4294901760, %v167_v36  ;;  %v182_v47 = vand.u32 4294901760, %v181_v44  ;;  %v121_v52 = vsel %vm101_vm1, %v95_v49, 0 }
  0x1f   :  { %v152_v25 = vand.u32 4294901760, %v151_v21  ;;  %232 = vmatpush.msra.mxu1 %v231_v26  ;;  %v176_v46 = vand.u32 4294901760, %v175_v43  ;;  %v190_v54 = vand.u32 4294901760, %v189_v51  ;;  %v196_v55 = vand.u32 4294901760, %v121_v52 }
  0x20   :  { %v183_v50 = vsub.f32 %v181_v44, %v182_v47  ;;  %v124_v59 = vsel %vm101_vm1, %v96_v56, 0  ;;  %v557_v6 = vand.u32 4294901760, %v516_v5  ;;  %v559_v18 = vand.u32 4294901760, %v515_v17 }
  0x21   :  { %153 = vmatmul.f32.vlgmr.msra.gmra.mxu0 %v152_v25  ;;  %238 = vmatpush.msra.mxu1 %v237_v27  ;;  %v191_v57 = vsub.f32 %v189_v51, %v190_v54  ;;  %v197_v58 = vsub.f32 %v121_v52, %v196_v55  ;;  %v204_v62 = vand.u32 4294901760, %v124_v59  ;;  %vm932_vm3 = vcmask 261120  }
  0x22   :  { %240 = vmatmul.f32.vlgmr.msra.gmra.mxu1 %v3472_v8  ;;  %v184_v53 = vand.u32 4294901760, %v183_v50  ;;  %558 = vmatpush.msrb.mxu2 %v557_v6  ;;  %v647_v19 = vsub.f32 %v515_v17, %v559_v18  ;;  %vm3103_vm8 = vcmask 105552   ;;  %vm3094_vm9 = vcmask 7168  }
  0x23   :  { %470 = vmatpush.msrb.mxu1 %v144_v7  ;;  %v192_v60 = vand.u32 4294901760, %v191_v57  ;;  %v198_v61 = vand.u32 4294901760, %v197_v58  ;;  %v205_v0 = vsub.f32 %v124_v59, %v204_v62  ;;  %v641_v7 = vsub.f32 %v516_v5, %v557_v6 }
  0x24   :  { %299 = vmatmul.f32.gmra.mxu2 %v157_v16  ;;  %v648_v21 = vand.u32 4294901760, %v647_v19  ;;  %vm3096_vm10 = vcmask 15360   ;;  %vm3157_vm1 = vcmask 523264  }
  0x25   :  { %360 = vmatmul.f32.gmra.mxu3 %v158_v23  ;;  %472 = vmatpush.msrb.mxu1 %v146_v4  ;;  %v199_v63 = vsub.f32 %v197_v58, %v198_v61  ;;  %v206_v2 = vand.u32 4294901760, %v205_v0 }
  0x26   :  { %701 = vmatpush.msra.mxu0 %v641_v7  ;;  %560 = vmatpush.msrb.mxu2 %v559_v18  ;;  %v649_v23 = vsub.f32 %v647_v19, %v648_v21 }
  0x27   :  { %v200_v1 = vand.u32 4294901760, %v199_v63  ;;  %v207_v3 = vsub.f32 %v205_v0, %v206_v2  ;;  %761 = vmatpush.msra.mxu1 %v557_v6 }
  0x28   :  { %704 = vmatpush.msra.mxu0 %v647_v19 }
  0x29   :  { %161 = vmatmul.f32.gmra.mxu0 %v160_v32  ;;  %v208_v4 = vand.u32 4294901760, %v207_v3  ;;  %763 = vmatpush.msra.mxu1 %v559_v18 }
  0x2a   :  { %244 = vmatmul.f32.gmra.mxu1 %v3475_v12 }
  0x2c   :  { %304 = vmatmul.f32.gmra.mxu2 %v165_v30 }
  0x2d   :  { %366 = vmatmul.f32.gmra.mxu3 %v166_v33 }
  0x31   :  { %169 = vmatmul.f32.gmra.mxu0 %v168_v39 }
  0x32   :  { %248 = vmatmul.f32.gmra.mxu1 %v3480_v24 }
  0x34   :  { %309 = vmatmul.f32.gmra.mxu2 %v173_v37 }
  0x35   :  { %372 = vmatmul.f32.gmra.mxu3 %v174_v40 }
  0x39   :  { %177 = vmatmul.f32.gmra.mxu0 %v176_v46 }
  0x3a   :  { %252 = vmatmul.f32.gmra.mxu1 %v3485_v34 }
  0x3c   :  { %314 = vmatmul.f32.gmra.mxu2 %v181_v44 }
  0x3d   :  { %378 = vmatmul.f32.gmra.mxu3 %v182_v47 }
  0x41   :  { %185 = vmatmul.f32.gmra.mxu0 %v184_v53 }
  0x42   :  { %256 = vmatmul.f32.gmra.mxu1 %v180_v41 }
  0x44   :  { %319 = vmatmul.f32.gmra.mxu2 %v189_v51 }
  0x45   :  { %384 = vmatmul.f32.gmra.mxu3 %v190_v54 }
  0x49   :  { %193 = vmatmul.f32.gmra.mxu0 %v192_v60 }
  0x4a   :  { %260 = vmatmul.f32.gmra.mxu1 %v188_v48 }
  0x4c   :  { %324 = vmatmul.f32.gmra.mxu2 %v197_v58 }
  0x4d   :  { %390 = vmatmul.f32.gmra.mxu3 %v198_v61 }
  0x51   :  { %201 = vmatmul.f32.gmra.mxu0 %v200_v1 }
  0x52   :  { %264 = vmatmul.f32.gmra.mxu1 %v196_v55 }
  0x54   :  { %329 = vmatmul.f32.gmra.mxu2 %v205_v0 }
  0x55   :  { %396 = vmatmul.f32.gmra.mxu3 %v206_v2 }
  0x59   :  { %209 = vmatmul.f32.gmra.mxu0 %v208_v4 }
  0x5a   :  { %268 = vmatmul.f32.gmra.mxu1 %v204_v62 }
  0x61   :  { %423 = vmatmul.f32.vlgmr.msrb.gmra.mxu0 %v3472_v8 }
  0x62   :  { %474 = vmatmul.f32.vlgmr.msrb.gmra.mxu1 %v3472_v8  ;;  %v642_v8 = vand.u32 4294901760, %v641_v7 }
  0x64   :  { %v643_v9 = vsub.f32 %v641_v7, %v642_v8  ;;  %830 = vmatpush.msra.mxu2 %v642_v8 }
  0x66   :  { %v644_v10 = vand.u32 4294901760, %v643_v9  ;;  %834 = vmatpush.msra.mxu2 %v648_v21 }
  0x68   :  { %645 = vmatpush.msrb.mxu3 %v644_v10 }
  0x69   :  { %427 = vmatmul.f32.gmra.mxu0 %v3475_v12 }
  0x6a   :  { %478 = vmatmul.f32.gmra.mxu1 %v3475_v12 }
  0x71   :  { %431 = vmatmul.f32.gmra.mxu0 %v3480_v24 }
  0x72   :  { %482 = vmatmul.f32.gmra.mxu1 %v3480_v24  ;;  %v650_v24 = vand.u32 4294901760, %v649_v23 }
  0x74   :  { %651 = vmatpush.msrb.mxu3 %v650_v24 }
  0x76   :  { %883 = vmatpush.msra.mxu3 %v557_v6 }
  0x78   :  { %885 = vmatpush.msra.mxu3 %v559_v18 }
  0x79   :  { %435 = vmatmul.f32.gmra.mxu0 %v3485_v34 }
  0x7a   :  { %486 = vmatmul.f32.gmra.mxu1 %v3485_v34 }
  0x81   :  { %439 = vmatmul.f32.gmra.mxu0 %v180_v41 }
  0x82   :  { %490 = vmatmul.f32.gmra.mxu1 %v180_v41 }
  0x89   :  { %443 = vmatmul.f32.gmra.mxu0 %v188_v48 }
  0x8a   :  { %494 = vmatmul.f32.gmra.mxu1 %v188_v48 }
  0x91   :  { %447 = vmatmul.f32.gmra.mxu0 %v196_v55 }
  0x92   :  { %498 = vmatmul.f32.gmra.mxu1 %v196_v55 }
  0x99   :  { %451 = vmatmul.f32.gmra.mxu0 %v204_v62 }
  0x9a   :  { %502 = vmatmul.f32.gmra.mxu1 %v204_v62 }
  0x9e   :  { %v154_v11 = vpop.f32.mrf.mxu0 }
  0x9f   :  { %v241_v12 = vpop.f32.mrf.mxu1  ;;  %v295_v28 = vpop.f32.mrf.mxu2  ;;  %v155_v33 = vadd.f32 %v3509_v31, %v154_v11 }
  0xa0   :  { %v355_v30 = vpop.f32.mrf.mxu3 }
  0xa1   :  { %v242_v36 = vadd.f32 %v241_v12, %v155_v33 }
  0xa3   :  { %v296_v39 = vadd.f32 %v295_v28, %v242_v36 }
  0xa5   :  { %v356_v43 = vadd.f32 %v355_v30, %v296_v39 }
  0xa6   :  { %v162_v13 = vpop.f32.mrf.mxu0 }
  0xa7   :  { %v245_v14 = vpop.f32.mrf.mxu1  ;;  %v300_v35 = vpop.f32.mrf.mxu2  ;;  %v163_v40 = vadd.f32 %v3509_v31, %v162_v13 }
  0xa8   :  { %v361_v37 = vpop.f32.mrf.mxu3 }
  0xa9   :  { %v246_v44 = vadd.f32 %v245_v14, %v163_v40 }
  0xab   :  { %v301_v48 = vadd.f32 %v300_v35, %v246_v44 }
  0xad   :  { %v362_v53 = vadd.f32 %v361_v37, %v301_v48 }
  0xae   :  { %v170_v15 = vpop.f32.mrf.mxu0 }
  0xaf   :  { %v249_v16 = vpop.f32.mrf.mxu1  ;;  %v305_v42 = vpop.f32.mrf.mxu2  ;;  %v171_v49 = vadd.f32 %v3509_v31, %v170_v15 }
  0xb0   :  { %v367_v47 = vpop.f32.mrf.mxu3 }
  0xb1   :  { %v250_v54 = vadd.f32 %v249_v16, %v171_v49 }
  0xb3   :  { %v306_v60 = vadd.f32 %v305_v42, %v250_v54 }
  0xb5   :  { %v368_v4 = vadd.f32 %v367_v47, %v306_v60 }
  0xb6   :  { %v178_v20 = vpop.f32.mrf.mxu0 }
  0xb7   :  { %v253_v22 = vpop.f32.mrf.mxu1  ;;  %v310_v55 = vpop.f32.mrf.mxu2  ;;  %v179_v61 = vadd.f32 %v3509_v31, %v178_v20 }
  0xb8   :  { %v373_v0 = vpop.f32.mrf.mxu3 }
  0xb9   :  { %v254_v5 = vadd.f32 %v253_v22, %v179_v61 }
  0xbb   :  { %v311_v13 = vadd.f32 %v310_v55, %v254_v5 }
  0xbd   :  { %v374_v21 = vadd.f32 %v373_v0, %v311_v13 }
  0xbe   :  { %v186_v25 = vpop.f32.mrf.mxu0 }
  0xbf   :  { %v3503_v26 = vpop.f32.mrf.mxu1  ;;  %v315_v12 = vpop.f32.mrf.mxu2  ;;  %v187_v14 = vadd.f32 %v3509_v31, %v186_v25 }
  0xc0   :  { %v379_v19 = vpop.f32.mrf.mxu3 }
  0xc1   :  { %v258_v22 = vadd.f32 %v3503_v26, %v187_v14 }
  0xc3   :  { %v316_v35 = vadd.f32 %v315_v12, %v258_v22 }
  0xc5   :  { %v380_v44 = vadd.f32 %v379_v19, %v316_v35 }
  0xc6   :  { %v3505_v27 = vpop.f32.mrf.mxu0 }
  0xc7   :  { %v3507_v29 = vpop.f32.mrf.mxu1  ;;  %v195_v36 = vadd.f32 %v3509_v31, %v3505_v27  ;;  %v320_v26 = vpop.f32.mrf.mxu2 }
  0xc8   :  { %v385_v47 = vpop.f32.mrf.mxu3 }
  0xce   :  { %v3511_v32 = vpop.f32.mrf.mxu0 }
  0xcf   :  { %v3514_v34 = vpop.f32.mrf.mxu1 }
  0xd6   :  { %v3516_v38 = vpop.f32.mrf.mxu0 }
  0xd7   :  { %v3519_v41 = vpop.f32.mrf.mxu1  ;;  %v211_v5 = vadd.f32 %v3509_v31, %v3516_v38 }
  0xd9   :  { %v270_v12 = vadd.f32 %v3519_v41, %v211_v5  ;;  %v930_v41 = vld [vmem:[%s3993_s5 + $0x18] sm:$0xff]  ;;  %v927_v5 = vld [vmem:[%s3993_s5] sm:$0xff] }
  0xde   :  { %v424_v45 = vpop.f32.mrf.mxu0 }
  0xdf   :  { %v425_v46 = vadd.f32 %v424_v45, %v356_v43  ;;  %v475_v50 = vpop.f32.mrf.mxu1  ;;  %v262_v45 = vadd.f32 %v3507_v29, %v195_v36 }
  0xe1   :  { %v476_v51 = vadd.f32 %v475_v50, %v425_v46 }
  0xe3   :  { %v506_v52 = vmax.f32 %v476_v51, 0.0 }
  0xe5   :  { %v520_v56 = vsel %vm518_vm2, %v506_v52, 0  ;;  %v321_v52 = vadd.f32 %v320_v26, %v262_v45 }
  0xe6   :  { %v428_v57 = vpop.f32.mrf.mxu0  ;;  %v3523_v58 = vand.u32 4294901760, %v520_v56 }
  0xe7   :  { %v429_v59 = vadd.f32 %v428_v57, %v362_v53  ;;  %v479_v63 = vpop.f32.mrf.mxu1  ;;  %v203_v53 = vadd.f32 %v3509_v31, %v3511_v32  ;;  %v325_v57 = vpop.f32.mrf.mxu2  ;;  %v386_v60 = vadd.f32 %v385_v47, %v321_v52 }
  0xe8   :  { %v562_v62 = vsub.f32 %v520_v56, %v3523_v58  ;;  %653 = vmatmul.f32.vlgmr.msrb.gmra.mxu3 %v3523_v58 }
  0xe9   :  { %v480_v1 = vadd.f32 %v479_v63, %v429_v59  ;;  %v266_v61 = vadd.f32 %v3514_v34, %v203_v53 }
  0xea   :  { %707 = vmatmul.f32.vlgmr.msra.gmra.mxu0 %v562_v62  ;;  %v563_v2 = vand.u32 4294901760, %v562_v62 }
  0xeb   :  { %v507_v3 = vmax.f32 %v480_v1, 0.0 }
  0xec   :  { %767 = vmatmul.f32.vlgmr.msra.gmra.mxu1 %v563_v2  ;;  %v564_v6 = vsub.f32 %v562_v62, %v563_v2 }
  0xed   :  { %v523_v7 = vsel %vm518_vm2, %v507_v3, 0  ;;  %v391_v3 = vpop.f32.mrf.mxu3 }
  0xee   :  { %v432_v8 = vpop.f32.mrf.mxu0  ;;  %v3529_v9 = vand.u32 4294901760, %v523_v7  ;;  %v565_v11 = vand.u32 4294901760, %v564_v6 }
  0xef   :  { %v433_v10 = vadd.f32 %v432_v8, %v368_v4  ;;  %v483_v15 = vpop.f32.mrf.mxu1  ;;  %v326_v4 = vadd.f32 %v325_v57, %v266_v61  ;;  %v330_v14 = vpop.f32.mrf.mxu2 }
  0xf0   :  { %566 = vmatmul.f32.vlgmr.msrb.gmra.mxu2 %v565_v11  ;;  %657 = vmatmul.f32.gmra.mxu3 %v3529_v9  ;;  %v570_v16 = vsub.f32 %v523_v7, %v3529_v9 }
  0xf1   :  { %v484_v17 = vadd.f32 %v483_v15, %v433_v10  ;;  %v392_v11 = vadd.f32 %v391_v3, %v326_v4 }
  0xf2   :  { %712 = vmatmul.f32.gmra.mxu0 %v570_v16  ;;  %v571_v18 = vand.u32 4294901760, %v570_v16 }
  0xf3   :  { %v508_v20 = vmax.f32 %v484_v17, 0.0 }
  0xf4   :  { %773 = vmatmul.f32.gmra.mxu1 %v571_v18  ;;  %v572_v23 = vsub.f32 %v570_v16, %v571_v18  ;;  %v331_v18 = vadd.f32 %v330_v14, %v270_v12 }
  0xf5   :  { %v526_v24 = vsel %vm518_vm2, %v508_v20, 0 }
  0xf6   :  { %v436_v28 = vpop.f32.mrf.mxu0  ;;  %v3536_v25 = vand.u32 4294901760, %v526_v24  ;;  %v573_v33 = vand.u32 4294901760, %v572_v23  ;;  %v3567_v23 = vand.u32 4294901760, %v930_v41 }
  0xf7   :  { %v437_v30 = vadd.f32 %v436_v28, %v374_v21  ;;  %v487_v37 = vpop.f32.mrf.mxu1  ;;  %v397_v21 = vpop.f32.mrf.mxu3 }
  0xf8   :  { %574 = vmatmul.f32.gmra.mxu2 %v573_v33  ;;  %661 = vmatmul.f32.gmra.mxu3 %v3536_v25  ;;  %v578_v39 = vsub.f32 %v526_v24, %v3536_v25  ;;  %v398_v33 = vadd.f32 %v397_v21, %v331_v18 }
  0xf9   :  { %v488_v40 = vadd.f32 %v487_v37, %v437_v30  ;;  %v3570_v30 = vsub.f32 %v930_v41, %v3567_v23  ;;  %949 = vmatpush.msrb.mxu0 %v3567_v23  ;;  %1049 = vmatpush.msrb.mxu3 %v3567_v23 }
  0xfa   :  { %717 = vmatmul.f32.gmra.mxu0 %v578_v39  ;;  %v579_v42 = vand.u32 4294901760, %v578_v39 }
  0xfb   :  { %v509_v43 = vmax.f32 %v488_v40, 0.0  ;;  %1020 = vmatpush.msrb.mxu2 %v3570_v30 }
  0xfc   :  { %779 = vmatmul.f32.gmra.mxu1 %v579_v42  ;;  %v580_v46 = vsub.f32 %v578_v39, %v579_v42  ;;  %v3577_v39 = vand.u32 4294901760, %v3570_v30 }
  0xfd   :  { %v529_v48 = vsel %vm518_vm2, %v509_v43, 0 }
  0xfe   :  { %v440_v27 = vpop.f32.mrf.mxu0  ;;  %v3544_v49 = vand.u32 4294901760, %v529_v48  ;;  %v581_v51 = vand.u32 4294901760, %v580_v46  ;;  %v980_v43 = vsub.f32 %v3570_v30, %v3577_v39 }
  0xff   :  { %v441_v50 = vadd.f32 %v440_v27, %v380_v44  ;;  %v491_v54 = vpop.f32.mrf.mxu1 }
 0x100   :  { %582 = vmatmul.f32.gmra.mxu2 %v581_v51  ;;  %665 = vmatmul.f32.gmra.mxu3 %v3544_v49  ;;  %v586_v29 = vsub.f32 %v529_v48, %v3544_v49  ;;  %v3585_v47 = vand.u32 4294901760, %v980_v43 }
 0x101   :  { %v492_v55 = vadd.f32 %v491_v54, %v441_v50 }
 0x102   :  { %722 = vmatmul.f32.gmra.mxu0 %v586_v29  ;;  %v587_v56 = vand.u32 4294901760, %v586_v29  ;;  %982 = vmatpush.msrb.mxu1 %v3585_v47 }
 0x103   :  { %v510_v59 = vmax.f32 %v492_v55, 0.0 }
 0x104   :  { %785 = vmatmul.f32.gmra.mxu1 %v587_v56  ;;  %v588_v62 = vsub.f32 %v586_v29, %v587_v56  ;;  %v929_v29 = vld [vmem:[%s3993_s5 + $0x10] sm:$0xff] }
 0x105   :  { %v532_v63 = vsel %vm518_vm2, %v510_v59, 0  ;;  %v3596_v55 = vand.u32 4294901760, %v929_v29 }
 0x106   :  { %v444_v0 = vpop.f32.mrf.mxu0  ;;  %v3552_v32 = vand.u32 4294901760, %v532_v63  ;;  %v589_v2 = vand.u32 4294901760, %v588_v62 }
 0x107   :  { %v445_v1 = vadd.f32 %v444_v0, %v386_v60  ;;  %v495_v6 = vpop.f32.mrf.mxu1  ;;  %v3599_v57 = vsub.f32 %v929_v29, %v3596_v55  ;;  %951 = vmatpush.msrb.mxu0 %v3596_v55  ;;  %1051 = vmatpush.msrb.mxu3 %v3596_v55  ;;  %v928_v0 = vld [vmem:[%s3993_s5 + $0x8] sm:$0xff]  ;;  %s3390_s5 = smov 64  }
 0x108   :  { %590 = vmatmul.f32.gmra.mxu2 %v589_v2  ;;  %669 = vmatmul.f32.gmra.mxu3 %v3552_v32  ;;  %v594_v34 = vsub.f32 %v532_v63, %v3552_v32 }
 0x109   :  { %v496_v7 = vadd.f32 %v495_v6, %v445_v1  ;;  %1023 = vmatpush.msrb.mxu2 %v3599_v57  ;;  %v3605_v60 = vand.u32 4294901760, %v3599_v57  ;;  %v3618_v1 = vand.u32 4294901760, %v928_v0  ;;  %v3641_v6 = vand.u32 4294901760, %v927_v5 }
 0x10a   :  { %727 = vmatmul.f32.gmra.mxu0 %v594_v34  ;;  %v595_v8 = vand.u32 4294901760, %v594_v34 }
 0x10b   :  { %v511_v10 = vmax.f32 %v496_v7, 0.0  ;;  %v986_v62 = vsub.f32 %v3599_v57, %v3605_v60  ;;  %v3621_v2 = vsub.f32 %v928_v0, %v3618_v1  ;;  %953 = vmatpush.msrb.mxu0 %v3618_v1  ;;  %1053 = vmatpush.msrb.mxu3 %v3618_v1 }
 0x10c   :  { %791 = vmatmul.f32.gmra.mxu1 %v595_v8  ;;  %v596_v13 = vsub.f32 %v594_v34, %v595_v8  ;;  %v3644_v34 = vsub.f32 %v927_v5, %v3641_v6 }
 0x10d   :  { %v535_v15 = vsel %vm518_vm2, %v511_v10, 0  ;;  %v3610_v63 = vand.u32 4294901760, %v986_v62  ;;  %1026 = vmatpush.msrb.mxu2 %v3621_v2  ;;  %v3627_v3 = vand.u32 4294901760, %v3621_v2  ;;  %955 = vmatpush.msrb.mxu0 %v3641_v6 }
 0x10e   :  { %v448_v16 = vpop.f32.mrf.mxu0  ;;  %v3560_v31 = vand.u32 4294901760, %v535_v15  ;;  %v597_v17 = vand.u32 4294901760, %v596_v13  ;;  %1055 = vmatpush.msrb.mxu3 %v3641_v6 }
 0x10f   :  { %v449_v38 = vadd.f32 %v448_v16, %v392_v11  ;;  %v499_v19 = vpop.f32.mrf.mxu1  ;;  %988 = vmatpush.msrb.mxu1 %v3610_v63  ;;  %1078 = vmatpush.msra.mxu0 %v3577_v39  ;;  %v3209_v11 = vld [vmem:[#allocation8 + $0x1] ss:$0 sm:$0xff] }
 0x110   :  { %598 = vmatmul.f32.gmra.mxu2 %v597_v17  ;;  %673 = vmatmul.f32.gmra.mxu3 %v3560_v31  ;;  %v602_v20 = vsub.f32 %v535_v15, %v3560_v31 }
 0x111   :  { %v500_v22 = vadd.f32 %v499_v19, %v449_v38  ;;  %1029 = vmatpush.msrb.mxu2 %v3644_v34  ;;  %1082 = vmatpush.msra.mxu0 %v3605_v60 }
 0x112   :  { %732 = vmatmul.f32.gmra.mxu0 %v602_v20  ;;  %v603_v24 = vand.u32 4294901760, %v602_v20 }
 0x113   :  { %v512_v28 = vmax.f32 %v500_v22, 0.0  ;;  %1086 = vmatpush.msra.mxu0 %v3627_v3 }
 0x114   :  { %797 = vmatmul.f32.gmra.mxu1 %v603_v24  ;;  %v604_v35 = vsub.f32 %v602_v20, %v603_v24 }
 0x115   :  { %v538_v36 = vsel %vm518_vm2, %v512_v28, 0 }
 0x116   :  { %v452_v37 = vpop.f32.mrf.mxu0  ;;  %v3579_v26 = vand.u32 4294901760, %v538_v36  ;;  %v605_v42 = vand.u32 4294901760, %v604_v35 }
 0x117   :  { %v453_v40 = vadd.f32 %v452_v37, %v398_v33  ;;  %v503_v44 = vpop.f32.mrf.mxu1 }
 0x118   :  { %606 = vmatmul.f32.gmra.mxu2 %v605_v42  ;;  %677 = vmatmul.f32.gmra.mxu3 %v3579_v26  ;;  %v610_v45 = vsub.f32 %v538_v36, %v3579_v26 }
 0x119   :  { %v504_v46 = vadd.f32 %v503_v44, %v453_v40 }
 0x11a   :  { %737 = vmatmul.f32.gmra.mxu0 %v610_v45  ;;  %v611_v48 = vand.u32 4294901760, %v610_v45 }
 0x11b   :  { %v513_v27 = vmax.f32 %v504_v46, 0.0 }
 0x11c   :  { %803 = vmatmul.f32.gmra.mxu1 %v611_v48  ;;  %v612_v50 = vsub.f32 %v610_v45, %v611_v48 }
 0x11d   :  { %v541_v51 = vsel %vm518_vm2, %v513_v27, 0 }
 0x11e   :  { %v3589_v52 = vand.u32 4294901760, %v541_v51  ;;  %v613_v53 = vand.u32 4294901760, %v612_v50 }
 0x120   :  { %614 = vmatmul.f32.gmra.mxu2 %v613_v53  ;;  %681 = vmatmul.f32.gmra.mxu3 %v3589_v52  ;;  %v618_v54 = vsub.f32 %v541_v51, %v3589_v52 }
 0x122   :  { %742 = vmatmul.f32.gmra.mxu0 %v618_v54  ;;  %v619_v56 = vand.u32 4294901760, %v618_v54 }
 0x124   :  { %809 = vmatmul.f32.gmra.mxu1 %v619_v56  ;;  %v620_v59 = vsub.f32 %v618_v54, %v619_v56 }
 0x126   :  { %v621_v61 = vand.u32 4294901760, %v620_v59 }
 0x128   :  { %622 = vmatmul.f32.gmra.mxu2 %v621_v61  ;;  %887 = vmatmul.f32.vlgmr.msra.gmra.mxu3 %v3523_v58 }
 0x129   :  { %1194 = vmatpush.msra.mxu3 %v3585_v47 }
 0x12b   :  { %1200 = vmatpush.msra.mxu3 %v3610_v63 }
 0x130   :  { %836 = vmatmul.f32.vlgmr.msra.gmra.mxu2 %v3523_v58  ;;  %891 = vmatmul.f32.gmra.mxu3 %v3529_v9  ;;  %v992_v58 = vsub.f32 %v3621_v2, %v3627_v3 }
 0x131   :  { %1161 = vmatpush.msra.mxu2 %v3567_v23 }
 0x132   :  { %v3633_v4 = vand.u32 4294901760, %v992_v58 }
 0x133   :  { %1163 = vmatpush.msra.mxu2 %v3596_v55 }
 0x134   :  { %994 = vmatpush.msrb.mxu1 %v3633_v4  ;;  %1206 = vmatpush.msra.mxu3 %v3633_v4 }
 0x135   :  { %1165 = vmatpush.msra.mxu2 %v3618_v1 }
 0x137   :  { %1167 = vmatpush.msra.mxu2 %v3641_v6 }
 0x138   :  { %840 = vmatmul.f32.gmra.mxu2 %v3529_v9  ;;  %895 = vmatmul.f32.gmra.mxu3 %v3536_v25  ;;  %v3652_v9 = vand.u32 4294901760, %v3644_v34 }
 0x13a   :  { %1090 = vmatpush.msra.mxu0 %v3652_v9 }
 0x140   :  { %844 = vmatmul.f32.gmra.mxu2 %v3536_v25  ;;  %899 = vmatmul.f32.gmra.mxu3 %v3544_v49  ;;  %v998_v25 = vsub.f32 %v3644_v34, %v3652_v9 }
 0x142   :  { %v3661_v7 = vand.u32 4294901760, %v998_v25 }
 0x144   :  { %1000 = vmatpush.msrb.mxu1 %v3661_v7  ;;  %1212 = vmatpush.msra.mxu3 %v3661_v7 }
 0x146   :  { %1109 = vmatpush.msra.mxu1 %v3567_v23 }
 0x148   :  { %848 = vmatmul.f32.gmra.mxu2 %v3544_v49  ;;  %903 = vmatmul.f32.gmra.mxu3 %v3552_v32  ;;  %v3389_v49 = vmov 0.0  }
 0x149   :  { %1111 = vmatpush.msra.mxu1 %v3596_v55  ;;  %961 = vmatmul.f32.vlgmr.msrb.gmra.mxu0 %v3389_v49 }
 0x14a   :  { %1002 = vmatmul.f32.vlgmr.msrb.gmra.mxu1 %v3389_v49  ;;  %1232 = vmatpush.msrb.mxu0 %v3570_v30 }
 0x14b   :  { %1113 = vmatpush.msra.mxu1 %v3618_v1 }
 0x14c   :  { %1235 = vmatpush.msrb.mxu0 %v3599_v57 }
 0x14d   :  { %1115 = vmatpush.msra.mxu1 %v3641_v6 }
 0x14e   :  { %1238 = vmatpush.msrb.mxu0 %v3621_v2 }
 0x14f   :  { %1261 = vmatpush.msrb.mxu1 %v3567_v23 }
 0x150   :  { %852 = vmatmul.f32.gmra.mxu2 %v3552_v32  ;;  %907 = vmatmul.f32.gmra.mxu3 %v3560_v31 }
 0x151   :  { %1263 = vmatpush.msrb.mxu1 %v3596_v55  ;;  %1092 = vmatmul.f32.vlgmr.msra.gmra.mxu0 %v3389_v49 }
 0x152   :  { %1117 = vmatmul.f32.vlgmr.msra.gmra.mxu1 %v3389_v49  ;;  %1241 = vmatpush.msrb.mxu0 %v3644_v34 }
 0x153   :  { %1265 = vmatpush.msrb.mxu1 %v3618_v1 }
 0x154   :  { %1373 = vmatpush.msra.mxu0 %v3567_v23 }
 0x155   :  { %1267 = vmatpush.msrb.mxu1 %v3641_v6 }
 0x156   :  { %1375 = vmatpush.msra.mxu0 %v3596_v55 }
 0x157   :  { %1406 = vmatpush.msra.mxu1 %v3585_v47 }
 0x158   :  { %856 = vmatmul.f32.gmra.mxu2 %v3560_v31  ;;  %911 = vmatmul.f32.gmra.mxu3 %v3579_v26 }
 0x159   :  { %1412 = vmatpush.msra.mxu1 %v3610_v63  ;;  %1377 = vmatpush.msra.mxu0 %v3618_v1 }
 0x15b   :  { %1418 = vmatpush.msra.mxu1 %v3633_v4  ;;  %1379 = vmatpush.msra.mxu0 %v3641_v6 }
 0x15d   :  { %1424 = vmatpush.msra.mxu1 %v3661_v7 }
 0x160   :  { %860 = vmatmul.f32.gmra.mxu2 %v3579_v26  ;;  %915 = vmatmul.f32.gmra.mxu3 %v3589_v52 }
 0x167   :  { %v708_v32 = vpop.f32.mrf.mxu0 }
 0x168   :  { %864 = vmatmul.f32.gmra.mxu2 %v3589_v52  ;;  %1059 = vmatmul.f32.vlgmr.msrb.gmra.mxu3 %v3389_v49 }
 0x169   :  { %1321 = vmatpush.msrb.mxu3 %v3567_v23  ;;  %v768_v8 = vpop.f32.mrf.mxu1 }
 0x16b   :  { %v654_v10 = vpop.f32.mrf.mxu3  ;;  %1323 = vmatpush.msrb.mxu3 %v3596_v55 }
 0x16d   :  { %1325 = vmatpush.msrb.mxu3 %v3618_v1 }
 0x16f   :  { %1327 = vmatpush.msrb.mxu3 %v3641_v6  ;;  %v713_v12 = vpop.f32.mrf.mxu0 }
 0x170   :  { %1032 = vmatmul.f32.vlgmr.msrb.gmra.mxu2 %v3389_v49 }
 0x171   :  { %1290 = vmatpush.msrb.mxu2 %v3577_v39  ;;  %v774_v15 = vpop.f32.mrf.mxu1 }
 0x173   :  { %v567_v13 = vpop.f32.mrf.mxu2  ;;  %v658_v14 = vpop.f32.mrf.mxu3  ;;  %1294 = vmatpush.msrb.mxu2 %v3605_v60 }
 0x174   :  { %v568_v16 = vadd.f32 %v3209_v11, %v567_v13 }
 0x175   :  { %1298 = vmatpush.msrb.mxu2 %v3627_v3 }
 0x176   :  { %v655_v31 = vadd.f32 %v654_v10, %v568_v16 }
 0x177   :  { %1302 = vmatpush.msrb.mxu2 %v3652_v9  ;;  %v718_v20 = vpop.f32.mrf.mxu0 }
 0x178   :  { %v709_v38 = vadd.f32 %v708_v32, %v655_v31 }
 0x179   :  { %v780_v21 = vpop.f32.mrf.mxu1 }
 0x17a   :  { %v769_v17 = vadd.f32 %v768_v8, %v709_v38 }
 0x17b   :  { %v575_v18 = vpop.f32.mrf.mxu2  ;;  %v662_v19 = vpop.f32.mrf.mxu3 }
 0x17c   :  { %v576_v41 = vadd.f32 %v3209_v11, %v575_v18 }
 0x17e   :  { %v659_v22 = vadd.f32 %v658_v14, %v576_v41 }
 0x17f   :  { %v723_v37 = vpop.f32.mrf.mxu0 }
 0x180   :  { %v714_v24 = vadd.f32 %v713_v12, %v659_v22 }
 0x181   :  { %v786_v40 = vpop.f32.mrf.mxu1 }
 0x182   :  { %v775_v28 = vadd.f32 %v774_v15, %v714_v24 }
 0x183   :  { %v583_v33 = vpop.f32.mrf.mxu2  ;;  %v666_v35 = vpop.f32.mrf.mxu3 }
 0x184   :  { %v584_v36 = vadd.f32 %v3209_v11, %v583_v33 }
 0x186   :  { %v663_v26 = vadd.f32 %v662_v19, %v584_v36 }
 0x187   :  { %v728_v27 = vpop.f32.mrf.mxu0 }
 0x188   :  { %v719_v42 = vadd.f32 %v718_v20, %v663_v26 }
 0x189   :  { %v792_v51 = vpop.f32.mrf.mxu1 }
 0x18a   :  { %v781_v43 = vadd.f32 %v780_v21, %v719_v42 }
 0x18b   :  { %v591_v44 = vpop.f32.mrf.mxu2  ;;  %v670_v45 = vpop.f32.mrf.mxu3 }
 0x18c   :  { %v592_v46 = vadd.f32 %v3209_v11, %v591_v44 }
 0x18e   :  { %v667_v48 = vadd.f32 %v666_v35, %v592_v46 }
 0x18f   :  { %v733_v61 = vpop.f32.mrf.mxu0 }
 0x190   :  { %v724_v50 = vadd.f32 %v723_v37, %v667_v48 }
 0x191   :  { %v798_v25 = vpop.f32.mrf.mxu1 }
 0x192   :  { %v787_v52 = vadd.f32 %v786_v40, %v724_v50 }
 0x193   :  { %v599_v53 = vpop.f32.mrf.mxu2  ;;  %v674_v54 = vpop.f32.mrf.mxu3 }
 0x194   :  { %v600_v29 = vadd.f32 %v3209_v11, %v599_v53 }
 0x196   :  { %v671_v56 = vadd.f32 %v670_v45, %v600_v29 }
 0x197   :  { %v738_v14 = vpop.f32.mrf.mxu0 }
 0x198   :  { %v729_v59 = vadd.f32 %v728_v27, %v671_v56 }
 0x199   :  { %v804_v16 = vpop.f32.mrf.mxu1 }
 0x19a   :  { %v793_v62 = vadd.f32 %v792_v51, %v729_v59 }
 0x19b   :  { %v607_v0 = vpop.f32.mrf.mxu2  ;;  %v678_v58 = vpop.f32.mrf.mxu3 }
 0x19c   :  { %v608_v5 = vadd.f32 %v3209_v11, %v607_v0 }
 0x19e   :  { %v675_v49 = vadd.f32 %v674_v54, %v608_v5 }
 0x19f   :  { %v743_v21 = vpop.f32.mrf.mxu0 }
 0x1a0   :  { %v734_v32 = vadd.f32 %v733_v61, %v675_v49 }
 0x1a1   :  { %v810_v24 = vpop.f32.mrf.mxu1 }
 0x1a2   :  { %v799_v8 = vadd.f32 %v798_v25, %v734_v32 }
 0x1a3   :  { %v615_v10 = vpop.f32.mrf.mxu2  ;;  %v682_v12 = vpop.f32.mrf.mxu3 }
 0x1a4   :  { %v616_v13 = vadd.f32 %v3209_v11, %v615_v10 }
 0x1a6   :  { %v679_v15 = vadd.f32 %v678_v58, %v616_v13 }
 0x1a8   :  { %v739_v31 = vadd.f32 %v738_v14, %v679_v15 }
 0x1aa   :  { %v805_v38 = vadd.f32 %v804_v16, %v739_v31 }
 0x1ab   :  { %v623_v18 = vpop.f32.mrf.mxu2  ;;  %v888_v19 = vpop.f32.mrf.mxu3 }
 0x1ac   :  { %v624_v20 = vadd.f32 %v3209_v11, %v623_v18 }
 0x1ae   :  { %v683_v41 = vadd.f32 %v682_v12, %v624_v20 }
 0x1b0   :  { %v744_v22 = vadd.f32 %v743_v21, %v683_v41 }
 0x1b2   :  { %v811_v33 = vadd.f32 %v810_v24, %v744_v22 }
 0x1b3   :  { %v837_v35 = vpop.f32.mrf.mxu2  ;;  %v892_v36 = vpop.f32.mrf.mxu3 }
 0x1b4   :  { %v838_v37 = vadd.f32 %v837_v35, %v769_v17 }
 0x1b6   :  { %v889_v26 = vadd.f32 %v888_v19, %v838_v37 }
 0x1bb   :  { %v841_v40 = vpop.f32.mrf.mxu2  ;;  %v896_v42 = vpop.f32.mrf.mxu3 }
 0x1bc   :  { %v842_v44 = vadd.f32 %v841_v40, %v775_v28 }
 0x1be   :  { %v3706_v45 = vadd.f32 %v892_v36, %v842_v44 }
 0x1c3   :  { %v845_v46 = vpop.f32.mrf.mxu2  ;;  %v900_v48 = vpop.f32.mrf.mxu3 }
 0x1c4   :  { %v846_v27 = vadd.f32 %v845_v46, %v781_v43 }
 0x1c6   :  { %v3708_v50 = vadd.f32 %v896_v42, %v846_v27  ;;  %v962_v49 = vpop.f32.mrf.mxu0 }
 0x1c7   :  { %v1003_v13 = vpop.f32.mrf.mxu1 }
 0x1cb   :  { %v849_v11 = vpop.f32.mrf.mxu2  ;;  %v904_v53 = vpop.f32.mrf.mxu3 }
 0x1cc   :  { %v850_v51 = vadd.f32 %v849_v11, %v787_v52 }
 0x1ce   :  { %v3710_v54 = vadd.f32 %v900_v48, %v850_v51  ;;  %v1093_v31 = vpop.f32.mrf.mxu0 }
 0x1cf   :  { %v1118_v18 = vpop.f32.mrf.mxu1 }
 0x1d3   :  { %v853_v29 = vpop.f32.mrf.mxu2  ;;  %v908_v17 = vpop.f32.mrf.mxu3 }
 0x1d4   :  { %v854_v56 = vadd.f32 %v853_v29, %v793_v62  ;;  %v1004_v62 = vadd.f32 %v1003_v13, %v962_v49 }
 0x1d6   :  { %v3712_v59 = vadd.f32 %v904_v53, %v854_v56 }
 0x1db   :  { %v857_v61 = vpop.f32.mrf.mxu2  ;;  %v912_v58 = vpop.f32.mrf.mxu3 }
 0x1dc   :  { %v858_v0 = vadd.f32 %v857_v61, %v799_v8 }
 0x1de   :  { %v3714_v28 = vadd.f32 %v908_v17, %v858_v0 }
 0x1e3   :  { %v861_v5 = vpop.f32.mrf.mxu2  ;;  %v916_v32 = vpop.f32.mrf.mxu3 }
 0x1e4   :  { %v862_v25 = vadd.f32 %v861_v5, %v805_v38 }
 0x1e6   :  { %v3716_v43 = vadd.f32 %v912_v58, %v862_v25 }
 0x1eb   :  { %v865_v52 = vpop.f32.mrf.mxu2  ;;  %v1060_v15 = vpop.f32.mrf.mxu3 }
 0x1ec   :  { %v866_v10 = vadd.f32 %v865_v52, %v811_v33 }
 0x1ee   :  { %v3718_v12 = vadd.f32 %v916_v32, %v866_v10 }
 0x1f3   :  { %v1033_v14 = vpop.f32.mrf.mxu2 }
 0x1f4   :  { %v1034_v16 = vadd.f32 %v1033_v14, %v1004_v62 }
 0x1f6   :  { %v1061_v8 = vadd.f32 %v1060_v15, %v1034_v16 }
 0x1f8   :  { %v1094_v19 = vadd.f32 %v1093_v31, %v1061_v8 }
 0x1fa   :  { %v1119_v20 = vadd.f32 %v1118_v18, %v1094_v19 }
 0x1fc   :  { %v1121_v41 = vadd.f32 %v1119_v20, %v889_v26 }
 0x1fe   :  { %3215 = vtanh.f32 %v1121_v41 }
 0x204   :  { %v3216_v38 = vpop.eup %3215 }
 0x205   :  { %1127 = vrot.lane.b32.xlu0 %v3216_v38, %s3390_s5  ;;  %v1123_v21 = vmul.f32 0.5, %v3216_v38 }
 0x207   :  { %v1124_v22 = vadd.f32 0.5, %v1123_v21 }
 0x209   :  { %v1125_v35 = vmul.f32 0.0, %v1124_v22 }
 0x277   :  { %v1128_v24 = vpop.permute.xlu0 %1127 }
 0x278   :  { %v1130_v33 = vmul.f32 %v1128_v24, %v1124_v22 }
 0x27a   :  { %1132 = vrot.lane.b32.xlu0 %v1130_v33, %s3391_s12 }
 0x2ec   :  { %v1133_v36 = vpop.permute.xlu0 %1132 }
 0x2ed   :  { %v3722_v37 = vadd.f32 %v1133_v36, %v1125_v35 }
 0x2ef   :  { %3217 = vtanh.f32 %v3722_v37 }
 0x2f5   :  { %v3218_v40 = vpop.eup %3217 }
 0x2f6   :  { %1138 = vrot.lane.b32.xlu1 %v3218_v40, %s3390_s5 }
 0x368   :  { %v1139_v26 = vpop.permute.xlu1 %1138 }
 0x369   :  { %v1141_v42 = vmul.f32 %v1139_v26, %v1124_v22 }
 0x36b   :  { %1144 = vrot.lane.b32.xlu1 %v1141_v42, %s3391_s12 }
 0x3dd   :  { %v1145_v44 = vpop.permute.xlu1 %1144 }
 0x3de   :  { %v1146_v46 = vsel %vm932_vm3, %v1145_v44, 0 }
 0x3df   :  { %v1168_v48 = vand.u32 4294901760, %v1146_v46 }
 0x3e1   :  { %v1169_v27 = vsub.f32 %v1146_v46, %v1168_v48  ;;  %1214 = vmatmul.f32.vlgmr.msra.gmra.mxu3 %v1168_v48 }
 0x3e2   :  { %1473 = vmatpush.msra.mxu3 %v3567_v23 }
 0x3e3   :  { %v1170_v11 = vand.u32 4294901760, %v1169_v27  ;;  %1244 = vmatmul.f32.vlgmr.msrb.gmra.mxu0 %v1169_v27 }
 0x3e4   :  { %1475 = vmatpush.msra.mxu3 %v3596_v55  ;;  %1502 = vmatpush.msrb.mxu0 %v3577_v39 }
 0x3e5   :  { %v1171_v51 = vsub.f32 %v1169_v27, %v1170_v11  ;;  %1271 = vmatmul.f32.vlgmr.msrb.gmra.mxu1 %v1170_v11 }
 0x3e6   :  { %1477 = vmatpush.msra.mxu3 %v3618_v1  ;;  %1533 = vmatpush.msrb.mxu1 %v3567_v23 }
 0x3e7   :  { %v1172_v53 = vand.u32 4294901760, %v1171_v51  ;;  %1506 = vmatpush.msrb.mxu0 %v3605_v60 }
 0x3e8   :  { %1479 = vmatpush.msra.mxu3 %v3641_v6  ;;  %1535 = vmatpush.msrb.mxu1 %v3596_v55 }
 0x3e9   :  { %1173 = vmatmul.f32.vlgmr.msra.gmra.mxu2 %v1172_v53  ;;  %1329 = vmatmul.f32.vlgmr.msrb.gmra.mxu3 %v1168_v48 }
 0x3ea   :  { %1444 = vmatpush.msra.mxu2 %v3570_v30  ;;  %1537 = vmatpush.msrb.mxu1 %v3618_v1 }
 0x3eb   :  { %1510 = vmatpush.msrb.mxu0 %v3627_v3  ;;  %1618 = vmatpush.msrb.mxu3 %v3585_v47 }
 0x3ec   :  { %1447 = vmatpush.msra.mxu2 %v3599_v57  ;;  %1539 = vmatpush.msrb.mxu1 %v3641_v6 }
 0x3ed   :  { %1514 = vmatpush.msrb.mxu0 %v3652_v9  ;;  %1624 = vmatpush.msrb.mxu3 %v3610_v63 }
 0x3ee   :  { %1450 = vmatpush.msra.mxu2 %v3621_v2 }
 0x3ef   :  { %1630 = vmatpush.msrb.mxu3 %v3633_v4 }
 0x3f0   :  { %1453 = vmatpush.msra.mxu2 %v3644_v34 }
 0x3f1   :  { %1304 = vmatmul.f32.vlgmr.msrb.gmra.mxu2 %v1168_v48  ;;  %1636 = vmatpush.msrb.mxu3 %v3661_v7 }
 0x3f2   :  { %1585 = vmatpush.msrb.mxu2 %v3567_v23 }
 0x3f4   :  { %1587 = vmatpush.msrb.mxu2 %v3596_v55 }
 0x3f6   :  { %1589 = vmatpush.msrb.mxu2 %v3618_v1 }
 0x3f8   :  { %1591 = vmatpush.msrb.mxu2 %v3641_v6 }
 0x460   :  { %v1245_v61 = vpop.f32.mrf.mxu0 }
 0x462   :  { %v1272_v58 = vpop.f32.mrf.mxu1 }
 0x464   :  { %v1215_v29 = vpop.f32.mrf.mxu3 }
 0x46c   :  { %v1174_v56 = vpop.f32.mrf.mxu2  ;;  %v1330_v32 = vpop.f32.mrf.mxu3 }
 0x46d   :  { %v1216_v17 = vadd.f32 %v1215_v29, %v1174_v56 }
 0x46f   :  { %v1246_v0 = vadd.f32 %v1245_v61, %v1216_v17 }
 0x471   :  { %v1273_v5 = vadd.f32 %v1272_v58, %v1246_v0 }
 0x474   :  { %v1305_v25 = vpop.f32.mrf.mxu2 }
 0x475   :  { %v1306_v49 = vadd.f32 %v1305_v25, %v1273_v5 }
 0x477   :  { %v1331_v52 = vadd.f32 %v1330_v32, %v1306_v49 }
 0x479   :  { %v1333_v10 = vadd.f32 %v1331_v52, %v3706_v45 }
 0x47b   :  { %3219 = vtanh.f32 %v1333_v10 }
 0x481   :  { %v3220_v13 = vpop.eup %3219 }
 0x482   :  { %1339 = vrot.lane.b32.xlu2 %v3220_v13, %s3390_s5  ;;  %v1335_v62 = vmul.f32 0.5, %v3220_v13 }
 0x484   :  { %v1336_v14 = vadd.f32 0.5, %v1335_v62 }
 0x486   :  { %v1337_v31 = vmul.f32 %v1336_v14, %v3722_v37 }
 0x4dc   :  { %v1340_v15 = vpop.permute.xlu2 %1339 }
 0x4dd   :  { %v1342_v16 = vmul.f32 %v1340_v15, %v1336_v14 }
 0x4df   :  { %1344 = vrot.lane.b32.xlu2 %v1342_v16, %s3391_s12 }
 0x539   :  { %v1345_v8 = vpop.permute.xlu2 %1344 }
 0x53a   :  { %v3756_v18 = vadd.f32 %v1345_v8, %v1337_v31 }
 0x53c   :  { %3221 = vtanh.f32 %v3756_v18 }
 0x542   :  { %v3222_v19 = vpop.eup %3221 }
 0x543   :  { %1350 = vrot.lane.b32.xlu0 %v3222_v19, %s3390_s5 }
 0x5b5   :  { %v1351_v45 = vpop.permute.xlu0 %1350 }
 0x5b6   :  { %v1353_v20 = vmul.f32 %v1351_v45, %v1336_v14 }
 0x5b8   :  { %1356 = vrot.lane.b32.xlu1 %v1353_v20, %s3391_s12 }
 0x62a   :  { %v1357_v41 = vpop.permute.xlu1 %1356 }
 0x62b   :  { %v1358_v38 = vsel %vm932_vm3, %v1357_v41, 0 }
 0x62c   :  { %v1380_v21 = vand.u32 4294901760, %v1358_v38 }
 0x62e   :  { %v1381_v22 = vsub.f32 %v1358_v38, %v1380_v21  ;;  %1426 = vmatmul.f32.vlgmr.msra.gmra.mxu1 %v1380_v21 }
 0x62f   :  { %1685 = vmatpush.msra.mxu1 %v3567_v23 }
 0x630   :  { %v1382_v24 = vand.u32 4294901760, %v1381_v22  ;;  %1456 = vmatmul.f32.vlgmr.msra.gmra.mxu2 %v1381_v22 }
 0x631   :  { %1687 = vmatpush.msra.mxu1 %v3596_v55  ;;  %1714 = vmatpush.msra.mxu2 %v3577_v39 }
 0x632   :  { %v1383_v33 = vsub.f32 %v1381_v22, %v1382_v24  ;;  %1483 = vmatmul.f32.vlgmr.msra.gmra.mxu3 %v1382_v24 }
 0x633   :  { %1689 = vmatpush.msra.mxu1 %v3618_v1  ;;  %1745 = vmatpush.msra.mxu3 %v3567_v23 }
 0x634   :  { %v1384_v35 = vand.u32 4294901760, %v1383_v33  ;;  %1718 = vmatpush.msra.mxu2 %v3605_v60 }
 0x635   :  { %1691 = vmatpush.msra.mxu1 %v3641_v6  ;;  %1747 = vmatpush.msra.mxu3 %v3596_v55 }
 0x636   :  { %1385 = vmatmul.f32.vlgmr.msra.gmra.mxu0 %v1384_v35  ;;  %1541 = vmatmul.f32.vlgmr.msrb.gmra.mxu1 %v1380_v21 }
 0x637   :  { %1656 = vmatpush.msra.mxu0 %v3570_v30  ;;  %1749 = vmatpush.msra.mxu3 %v3618_v1 }
 0x638   :  { %1722 = vmatpush.msra.mxu2 %v3627_v3  ;;  %1830 = vmatpush.msrb.mxu1 %v3585_v47 }
 0x639   :  { %1659 = vmatpush.msra.mxu0 %v3599_v57  ;;  %1751 = vmatpush.msra.mxu3 %v3641_v6 }
 0x63a   :  { %1726 = vmatpush.msra.mxu2 %v3652_v9  ;;  %1836 = vmatpush.msrb.mxu1 %v3610_v63 }
 0x63b   :  { %1662 = vmatpush.msra.mxu0 %v3621_v2 }
 0x63c   :  { %1842 = vmatpush.msrb.mxu1 %v3633_v4 }
 0x63d   :  { %1665 = vmatpush.msra.mxu0 %v3644_v34 }
 0x63e   :  { %1516 = vmatmul.f32.vlgmr.msrb.gmra.mxu0 %v1380_v21  ;;  %1848 = vmatpush.msrb.mxu1 %v3661_v7 }
 0x63f   :  { %1797 = vmatpush.msrb.mxu0 %v3567_v23 }
 0x641   :  { %1799 = vmatpush.msrb.mxu0 %v3596_v55 }
 0x643   :  { %1801 = vmatpush.msrb.mxu0 %v3618_v1 }
 0x645   :  { %1803 = vmatpush.msrb.mxu0 %v3641_v6 }
 0x6ab   :  { %v1427_v36 = vpop.f32.mrf.mxu1 }
 0x6b3   :  { %v1386_v37 = vpop.f32.mrf.mxu0  ;;  %v1457_v26 = vpop.f32.mrf.mxu2 }
 0x6b4   :  { %v1428_v40 = vadd.f32 %v1427_v36, %v1386_v37  ;;  %v1542_v11 = vpop.f32.mrf.mxu1 }
 0x6b5   :  { %v1484_v44 = vpop.f32.mrf.mxu3 }
 0x6b6   :  { %v1458_v42 = vadd.f32 %v1457_v26, %v1428_v40 }
 0x6b8   :  { %v1485_v46 = vadd.f32 %v1484_v44, %v1458_v42 }
 0x6bb   :  { %v1517_v48 = vpop.f32.mrf.mxu0 }
 0x6bc   :  { %v1518_v27 = vadd.f32 %v1517_v48, %v1485_v46 }
 0x6be   :  { %v1543_v51 = vadd.f32 %v1542_v11, %v1518_v27 }
 0x6c0   :  { %v1545_v53 = vadd.f32 %v1543_v51, %v3708_v50 }
 0x6c2   :  { %3223 = vtanh.f32 %v1545_v53 }
 0x6c8   :  { %v3224_v29 = vpop.eup %3223 }
 0x6c9   :  { %1551 = vrot.lane.b32.xlu2 %v3224_v29, %s3390_s5  ;;  %v1547_v56 = vmul.f32 0.5, %v3224_v29 }
 0x6cb   :  { %v1548_v17 = vadd.f32 0.5, %v1547_v56 }
 0x6cd   :  { %v1549_v58 = vmul.f32 %v1548_v17, %v3756_v18 }
 0x723   :  { %v1552_v61 = vpop.permute.xlu2 %1551 }
 0x724   :  { %v1554_v0 = vmul.f32 %v1552_v61, %v1548_v17 }
 0x726   :  { %1556 = vrot.lane.b32.xlu0 %v1554_v0, %s3391_s12 }
 0x798   :  { %v1557_v5 = vpop.permute.xlu0 %1556 }
 0x799   :  { %v3790_v25 = vadd.f32 %v1557_v5, %v1549_v58 }
 0x79b   :  { %3225 = vtanh.f32 %v3790_v25 }
 0x7a1   :  { %v3226_v49 = vpop.eup %3225 }
 0x7a2   :  { %1562 = vrot.lane.b32.xlu1 %v3226_v49, %s3390_s5 }
 0x814   :  { %v1563_v50 = vpop.permute.xlu1 %1562 }
 0x815   :  { %v1565_v32 = vmul.f32 %v1563_v50, %v1548_v17 }
 0x817   :  { %1568 = vrot.lane.b32.xlu2 %v1565_v32, %s3391_s12 }
 0x871   :  { %v1569_v52 = vpop.permute.xlu2 %1568 }
 0x872   :  { %v1570_v10 = vsel %vm932_vm3, %v1569_v52, 0 }
 0x873   :  { %v1592_v13 = vand.u32 4294901760, %v1570_v10 }
 0x875   :  { %v1593_v62 = vsub.f32 %v1570_v10, %v1592_v13  ;;  %1638 = vmatmul.f32.vlgmr.msrb.gmra.mxu3 %v1592_v13 }
 0x876   :  { %1897 = vmatpush.msrb.mxu3 %v3567_v23 }
 0x877   :  { %v1594_v14 = vand.u32 4294901760, %v1593_v62  ;;  %1668 = vmatmul.f32.vlgmr.msra.gmra.mxu0 %v1593_v62 }
 0x878   :  { %1899 = vmatpush.msrb.mxu3 %v3596_v55  ;;  %1926 = vmatpush.msra.mxu0 %v3577_v39 }
 0x879   :  { %v1595_v15 = vsub.f32 %v1593_v62, %v1594_v14  ;;  %1695 = vmatmul.f32.vlgmr.msra.gmra.mxu1 %v1594_v14 }
 0x87a   :  { %1901 = vmatpush.msrb.mxu3 %v3618_v1  ;;  %1957 = vmatpush.msra.mxu1 %v3567_v23 }
 0x87b   :  { %v1596_v16 = vand.u32 4294901760, %v1595_v15  ;;  %1930 = vmatpush.msra.mxu0 %v3605_v60 }
 0x87c   :  { %1903 = vmatpush.msrb.mxu3 %v3641_v6  ;;  %1959 = vmatpush.msra.mxu1 %v3596_v55 }
 0x87d   :  { %1597 = vmatmul.f32.vlgmr.msrb.gmra.mxu2 %v1596_v16  ;;  %1753 = vmatmul.f32.vlgmr.msra.gmra.mxu3 %v1592_v13 }
 0x87e   :  { %1868 = vmatpush.msrb.mxu2 %v3570_v30  ;;  %1961 = vmatpush.msra.mxu1 %v3618_v1 }
 0x87f   :  { %1934 = vmatpush.msra.mxu0 %v3627_v3  ;;  %2042 = vmatpush.msra.mxu3 %v3585_v47 }
 0x880   :  { %1871 = vmatpush.msrb.mxu2 %v3599_v57  ;;  %1963 = vmatpush.msra.mxu1 %v3641_v6 }
 0x881   :  { %1938 = vmatpush.msra.mxu0 %v3652_v9  ;;  %2048 = vmatpush.msra.mxu3 %v3610_v63 }
 0x882   :  { %1874 = vmatpush.msrb.mxu2 %v3621_v2 }
 0x883   :  { %2054 = vmatpush.msra.mxu3 %v3633_v4 }
 0x884   :  { %1877 = vmatpush.msrb.mxu2 %v3644_v34 }
 0x885   :  { %1728 = vmatmul.f32.vlgmr.msra.gmra.mxu2 %v1592_v13  ;;  %2060 = vmatpush.msra.mxu3 %v3661_v7 }
 0x886   :  { %2009 = vmatpush.msra.mxu2 %v3567_v23 }
 0x888   :  { %2011 = vmatpush.msra.mxu2 %v3596_v55 }
 0x88a   :  { %2013 = vmatpush.msra.mxu2 %v3618_v1 }
 0x88c   :  { %2015 = vmatpush.msra.mxu2 %v3641_v6 }
 0x8f4   :  { %v1669_v19 = vpop.f32.mrf.mxu0 }
 0x8f6   :  { %v1696_v20 = vpop.f32.mrf.mxu1 }
 0x8f8   :  { %v1639_v31 = vpop.f32.mrf.mxu3 }
 0x900   :  { %v1598_v8 = vpop.f32.mrf.mxu2  ;;  %v1754_v22 = vpop.f32.mrf.mxu3 }
 0x901   :  { %v1640_v18 = vadd.f32 %v1639_v31, %v1598_v8 }
 0x903   :  { %v1670_v45 = vadd.f32 %v1669_v19, %v1640_v18 }
 0x905   :  { %v1697_v41 = vadd.f32 %v1696_v20, %v1670_v45 }
 0x908   :  { %v1729_v38 = vpop.f32.mrf.mxu2 }
 0x909   :  { %v1730_v21 = vadd.f32 %v1729_v38, %v1697_v41 }
 0x90b   :  { %v1755_v24 = vadd.f32 %v1754_v22, %v1730_v21 }
 0x90d   :  { %v1757_v33 = vadd.f32 %v1755_v24, %v3710_v54 }
 0x90f   :  { %3227 = vtanh.f32 %v1757_v33 }
 0x915   :  { %v3228_v35 = vpop.eup %3227 }
 0x916   :  { %1763 = vrot.lane.b32.xlu0 %v3228_v35, %s3390_s5  ;;  %v1759_v36 = vmul.f32 0.5, %v3228_v35 }
 0x918   :  { %v1760_v37 = vadd.f32 0.5, %v1759_v36 }
 0x91a   :  { %v1761_v42 = vmul.f32 %v1760_v37, %v3790_v25 }
 0x988   :  { %v1764_v40 = vpop.permute.xlu0 %1763 }
 0x989   :  { %v1766_v26 = vmul.f32 %v1764_v40, %v1760_v37 }
 0x98b   :  { %1768 = vrot.lane.b32.xlu1 %v1766_v26, %s3391_s12 }
 0x9fd   :  { %v1769_v44 = vpop.permute.xlu1 %1768 }
 0x9fe   :  { %v3824_v46 = vadd.f32 %v1769_v44, %v1761_v42 }
 0xa00   :  { %3229 = vtanh.f32 %v3824_v46 }
 0xa06   :  { %v3230_v48 = vpop.eup %3229 }
 0xa07   :  { %1774 = vrot.lane.b32.xlu2 %v3230_v48, %s3390_s5 }
 0xa61   :  { %v1775_v54 = vpop.permute.xlu2 %1774 }
 0xa62   :  { %v1777_v27 = vmul.f32 %v1775_v54, %v1760_v37 }
 0xa64   :  { %1780 = vrot.lane.b32.xlu0 %v1777_v27, %s3391_s12 }
 0xad6   :  { %v1781_v11 = vpop.permute.xlu0 %1780 }
 0xad7   :  { %v1782_v51 = vsel %vm932_vm3, %v1781_v11, 0 }
 0xad8   :  { %v1804_v53 = vand.u32 4294901760, %v1782_v51 }
 0xada   :  { %v1805_v29 = vsub.f32 %v1782_v51, %v1804_v53  ;;  %1850 = vmatmul.f32.vlgmr.msrb.gmra.mxu1 %v1804_v53 }
 0xadb   :  { %2109 = vmatpush.msrb.mxu1 %v3567_v23 }
 0xadc   :  { %v1806_v56 = vand.u32 4294901760, %v1805_v29  ;;  %1880 = vmatmul.f32.vlgmr.msrb.gmra.mxu2 %v1805_v29 }
 0xadd   :  { %2111 = vmatpush.msrb.mxu1 %v3596_v55  ;;  %2138 = vmatpush.msrb.mxu2 %v3577_v39 }
 0xade   :  { %v1807_v17 = vsub.f32 %v1805_v29, %v1806_v56  ;;  %1907 = vmatmul.f32.vlgmr.msrb.gmra.mxu3 %v1806_v56 }
 0xadf   :  { %2113 = vmatpush.msrb.mxu1 %v3618_v1  ;;  %2169 = vmatpush.msrb.mxu3 %v3567_v23 }
 0xae0   :  { %v1808_v61 = vand.u32 4294901760, %v1807_v17  ;;  %2142 = vmatpush.msrb.mxu2 %v3605_v60 }
 0xae1   :  { %2115 = vmatpush.msrb.mxu1 %v3641_v6  ;;  %2171 = vmatpush.msrb.mxu3 %v3596_v55 }
 0xae2   :  { %1809 = vmatmul.f32.vlgmr.msrb.gmra.mxu0 %v1808_v61  ;;  %1965 = vmatmul.f32.vlgmr.msra.gmra.mxu1 %v1804_v53 }
 0xae3   :  { %2080 = vmatpush.msrb.mxu0 %v3570_v30  ;;  %2173 = vmatpush.msrb.mxu3 %v3618_v1 }
 0xae4   :  { %2146 = vmatpush.msrb.mxu2 %v3627_v3  ;;  %2254 = vmatpush.msra.mxu1 %v3585_v47 }
 0xae5   :  { %2083 = vmatpush.msrb.mxu0 %v3599_v57  ;;  %2175 = vmatpush.msrb.mxu3 %v3641_v6 }
 0xae6   :  { %2150 = vmatpush.msrb.mxu2 %v3652_v9  ;;  %2260 = vmatpush.msra.mxu1 %v3610_v63 }
 0xae7   :  { %2086 = vmatpush.msrb.mxu0 %v3621_v2 }
 0xae8   :  { %2266 = vmatpush.msra.mxu1 %v3633_v4 }
 0xae9   :  { %2089 = vmatpush.msrb.mxu0 %v3644_v34 }
 0xaea   :  { %1940 = vmatmul.f32.vlgmr.msra.gmra.mxu0 %v1804_v53  ;;  %2272 = vmatpush.msra.mxu1 %v3661_v7 }
 0xaeb   :  { %2221 = vmatpush.msra.mxu0 %v3567_v23 }
 0xaed   :  { %2223 = vmatpush.msra.mxu0 %v3596_v55 }
 0xaef   :  { %2225 = vmatpush.msra.mxu0 %v3618_v1 }
 0xaf1   :  { %2227 = vmatpush.msra.mxu0 %v3641_v6 }
 0xb57   :  { %v1851_v0 = vpop.f32.mrf.mxu1 }
 0xb5f   :  { %v1810_v58 = vpop.f32.mrf.mxu0  ;;  %v1881_v25 = vpop.f32.mrf.mxu2 }
 0xb60   :  { %v1852_v5 = vadd.f32 %v1851_v0, %v1810_v58  ;;  %v1966_v13 = vpop.f32.mrf.mxu1 }
 0xb61   :  { %v1908_v50 = vpop.f32.mrf.mxu3 }
 0xb62   :  { %v1882_v49 = vadd.f32 %v1881_v25, %v1852_v5 }
 0xb64   :  { %v1909_v32 = vadd.f32 %v1908_v50, %v1882_v49 }
 0xb67   :  { %v1941_v52 = vpop.f32.mrf.mxu0 }
 0xb68   :  { %v1942_v10 = vadd.f32 %v1941_v52, %v1909_v32 }
 0xb6a   :  { %v1967_v62 = vadd.f32 %v1966_v13, %v1942_v10 }
 0xb6c   :  { %v1969_v14 = vadd.f32 %v1967_v62, %v3712_v59 }
 0xb6e   :  { %3231 = vtanh.f32 %v1969_v14 }
 0xb74   :  { %v3232_v15 = vpop.eup %3231 }
 0xb75   :  { %1975 = vrot.lane.b32.xlu1 %v3232_v15, %s3390_s5  ;;  %v1971_v16 = vmul.f32 0.5, %v3232_v15 }
 0xb77   :  { %v1972_v31 = vadd.f32 0.5, %v1971_v16 }
 0xb79   :  { %v1973_v19 = vmul.f32 %v1972_v31, %v3824_v46 }
 0xbe7   :  { %v1976_v8 = vpop.permute.xlu1 %1975 }
 0xbe8   :  { %v1978_v18 = vmul.f32 %v1976_v8, %v1972_v31 }
 0xbea   :  { %1980 = vrot.lane.b32.xlu2 %v1978_v18, %s3391_s12 }
 0xc44   :  { %v1981_v45 = vpop.permute.xlu2 %1980 }
 0xc45   :  { %v3858_v20 = vadd.f32 %v1981_v45, %v1973_v19 }
 0xc47   :  { %3233 = vtanh.f32 %v3858_v20 }
 0xc4d   :  { %v3234_v41 = vpop.eup %3233 }
 0xc4e   :  { %1986 = vrot.lane.b32.xlu0 %v3234_v41, %s3390_s5 }
 0xcc0   :  { %v1987_v59 = vpop.permute.xlu0 %1986 }
 0xcc1   :  { %v1989_v38 = vmul.f32 %v1987_v59, %v1972_v31 }
 0xcc3   :  { %1992 = vrot.lane.b32.xlu1 %v1989_v38, %s3391_s12 }
 0xd35   :  { %v1993_v21 = vpop.permute.xlu1 %1992 }
 0xd36   :  { %v1994_v22 = vsel %vm932_vm3, %v1993_v21, 0 }
 0xd37   :  { %v2016_v24 = vand.u32 4294901760, %v1994_v22 }
 0xd39   :  { %v2017_v33 = vsub.f32 %v1994_v22, %v2016_v24  ;;  %2062 = vmatmul.f32.vlgmr.msra.gmra.mxu3 %v2016_v24 }
 0xd3a   :  { %2321 = vmatpush.msra.mxu3 %v3567_v23 }
 0xd3b   :  { %v2018_v35 = vand.u32 4294901760, %v2017_v33  ;;  %2092 = vmatmul.f32.vlgmr.msrb.gmra.mxu0 %v2017_v33 }
 0xd3c   :  { %2323 = vmatpush.msra.mxu3 %v3596_v55  ;;  %2350 = vmatpush.msrb.mxu0 %v3577_v39 }
 0xd3d   :  { %v2019_v36 = vsub.f32 %v2017_v33, %v2018_v35  ;;  %2119 = vmatmul.f32.vlgmr.msrb.gmra.mxu1 %v2018_v35 }
 0xd3e   :  { %2325 = vmatpush.msra.mxu3 %v3618_v1  ;;  %2381 = vmatpush.msrb.mxu1 %v3567_v23 }
 0xd3f   :  { %v2020_v37 = vand.u32 4294901760, %v2019_v36  ;;  %2354 = vmatpush.msrb.mxu0 %v3605_v60 }
 0xd40   :  { %2327 = vmatpush.msra.mxu3 %v3641_v6  ;;  %2383 = vmatpush.msrb.mxu1 %v3596_v55 }
 0xd41   :  { %2021 = vmatmul.f32.vlgmr.msra.gmra.mxu2 %v2020_v37  ;;  %2177 = vmatmul.f32.vlgmr.msrb.gmra.mxu3 %v2016_v24 }
 0xd42   :  { %2292 = vmatpush.msra.mxu2 %v3570_v30  ;;  %2385 = vmatpush.msrb.mxu1 %v3618_v1 }
 0xd43   :  { %2358 = vmatpush.msrb.mxu0 %v3627_v3  ;;  %2466 = vmatpush.msrb.mxu3 %v3585_v47 }
 0xd44   :  { %2295 = vmatpush.msra.mxu2 %v3599_v57  ;;  %2387 = vmatpush.msrb.mxu1 %v3641_v6 }
 0xd45   :  { %2362 = vmatpush.msrb.mxu0 %v3652_v9  ;;  %2472 = vmatpush.msrb.mxu3 %v3610_v63 }
 0xd46   :  { %2298 = vmatpush.msra.mxu2 %v3621_v2 }
 0xd47   :  { %2478 = vmatpush.msrb.mxu3 %v3633_v4 }
 0xd48   :  { %2301 = vmatpush.msra.mxu2 %v3644_v34 }
 0xd49   :  { %2152 = vmatmul.f32.vlgmr.msrb.gmra.mxu2 %v2016_v24  ;;  %2484 = vmatpush.msrb.mxu3 %v3661_v7 }
 0xd4a   :  { %2433 = vmatpush.msrb.mxu2 %v3567_v23 }
 0xd4c   :  { %2435 = vmatpush.msrb.mxu2 %v3596_v55 }
 0xd4e   :  { %2437 = vmatpush.msrb.mxu2 %v3618_v1 }
 0xd50   :  { %2439 = vmatpush.msrb.mxu2 %v3641_v6 }
 0xdb8   :  { %v2093_v26 = vpop.f32.mrf.mxu0 }
 0xdba   :  { %v2120_v44 = vpop.f32.mrf.mxu1 }
 0xdbc   :  { %v2063_v47 = vpop.f32.mrf.mxu3 }
 0xdc4   :  { %v2022_v40 = vpop.f32.mrf.mxu2  ;;  %v2178_v54 = vpop.f32.mrf.mxu3 }
 0xdc5   :  { %v2064_v63 = vadd.f32 %v2063_v47, %v2022_v40 }
 0xdc7   :  { %v2094_v42 = vadd.f32 %v2093_v26, %v2064_v63 }
 0xdc9   :  { %v2121_v4 = vadd.f32 %v2120_v44, %v2094_v42 }
 0xdcc   :  { %v2153_v46 = vpop.f32.mrf.mxu2 }
 0xdcd   :  { %v2154_v48 = vadd.f32 %v2153_v46, %v2121_v4 }
 0xdcf   :  { %v2179_v27 = vadd.f32 %v2178_v54, %v2154_v48 }
 0xdd1   :  { %v2181_v7 = vadd.f32 %v2179_v27, %v3714_v28 }
 0xdd3   :  { %3235 = vtanh.f32 %v2181_v7 }
 0xdd9   :  { %v3236_v11 = vpop.eup %3235 }
 0xdda   :  { %2187 = vrot.lane.b32.xlu2 %v3236_v11, %s3390_s5  ;;  %v2183_v51 = vmul.f32 0.5, %v3236_v11 }
 0xddc   :  { %v2184_v53 = vadd.f32 0.5, %v2183_v51 }
 0xdde   :  { %v2185_v17 = vmul.f32 %v2184_v53, %v3858_v20 }
 0xe34   :  { %v2188_v29 = vpop.permute.xlu2 %2187 }
 0xe35   :  { %v2190_v56 = vmul.f32 %v2188_v29, %v2184_v53 }
 0xe37   :  { %2192 = vrot.lane.b32.xlu0 %v2190_v56, %s3391_s12 }
 0xea9   :  { %v2193_v61 = vpop.permute.xlu0 %2192 }
 0xeaa   :  { %v2195_v0 = vadd.f32 %v2193_v61, %v2185_v17 }
 0xeac   :  { %3237 = vtanh.f32 %v2195_v0 }
 0xeb2   :  { %v3238_v58 = vpop.eup %3237 }
 0xeb3   :  { %2198 = vrot.lane.b32.xlu1 %v3238_v58, %s3390_s5 }
 0xf25   :  { %v2199_v5 = vpop.permute.xlu1 %2198 }
 0xf26   :  { %v2201_v28 = vmul.f32 %v2199_v5, %v2184_v53  ;;  %v3392_v5 = vmov 32.0  }
 0xf28   :  { %2204 = vrot.lane.b32.xlu2 %v2201_v28, %s3391_s12 }
 0xf82   :  { %v2205_v25 = vpop.permute.xlu2 %2204 }
 0xf83   :  { %v2206_v49 = vsel %vm932_vm3, %v2205_v25, 0 }
 0xf84   :  { %v2228_v50 = vand.u32 4294901760, %v2206_v49 }
 0xf86   :  { %v2229_v32 = vsub.f32 %v2206_v49, %v2228_v50  ;;  %2274 = vmatmul.f32.vlgmr.msra.gmra.mxu1 %v2228_v50 }
 0xf87   :  { %2533 = vmatpush.msra.mxu1 %v3567_v23 }
 0xf88   :  { %v2230_v52 = vand.u32 4294901760, %v2229_v32  ;;  %2304 = vmatmul.f32.vlgmr.msra.gmra.mxu2 %v2229_v32 }
 0xf89   :  { %2535 = vmatpush.msra.mxu1 %v3596_v55  ;;  %2562 = vmatpush.msra.mxu2 %v3577_v39 }
 0xf8a   :  { %v2231_v10 = vsub.f32 %v2229_v32, %v2230_v52  ;;  %2331 = vmatmul.f32.vlgmr.msra.gmra.mxu3 %v2230_v52 }
 0xf8b   :  { %2537 = vmatpush.msra.mxu1 %v3618_v1  ;;  %2593 = vmatpush.msra.mxu3 %v3567_v23 }
 0xf8c   :  { %v2232_v13 = vand.u32 4294901760, %v2231_v10  ;;  %2566 = vmatpush.msra.mxu2 %v3605_v60 }
 0xf8d   :  { %2539 = vmatpush.msra.mxu1 %v3641_v6  ;;  %2595 = vmatpush.msra.mxu3 %v3596_v55 }
 0xf8e   :  { %2233 = vmatmul.f32.vlgmr.msra.gmra.mxu0 %v2232_v13  ;;  %2389 = vmatmul.f32.vlgmr.msrb.gmra.mxu1 %v2228_v50 }
 0xf8f   :  { %2504 = vmatpush.msra.mxu0 %v3570_v30  ;;  %2597 = vmatpush.msra.mxu3 %v3618_v1 }
 0xf90   :  { %2570 = vmatpush.msra.mxu2 %v3627_v3 }
 0xf91   :  { %2507 = vmatpush.msra.mxu0 %v3599_v57  ;;  %2599 = vmatpush.msra.mxu3 %v3641_v6 }
 0xf92   :  { %2574 = vmatpush.msra.mxu2 %v3652_v9 }
 0xf93   :  { %2510 = vmatpush.msra.mxu0 %v3621_v2 }
 0xf95   :  { %2513 = vmatpush.msra.mxu0 %v3644_v34 }
 0xf96   :  { %2364 = vmatmul.f32.vlgmr.msrb.gmra.mxu0 %v2228_v50 }
0x1003   :  { %v2275_v23 = vpop.f32.mrf.mxu1 }
0x100b   :  { %v2234_v39 = vpop.f32.mrf.mxu0  ;;  %v2305_v60 = vpop.f32.mrf.mxu2 }
0x100c   :  { %v2276_v55 = vadd.f32 %v2275_v23, %v2234_v39  ;;  %v2390_v15 = vpop.f32.mrf.mxu1 }
0x100d   :  { %v2332_v62 = vpop.f32.mrf.mxu3 }
0x100e   :  { %v2306_v30 = vadd.f32 %v2305_v60, %v2276_v55  ;;  %v3210_v55 = vld [vmem:[#allocation8 + $0x2] ss:$0 sm:$0xff]  ;;  %v3211_v60 = vld [vmem:[#allocation8 + $0x3] ss:$0 sm:$0xff] }
0x1010   :  { %v2333_v1 = vadd.f32 %v2332_v62, %v2306_v30 }
0x1013   :  { %v2365_v14 = vpop.f32.mrf.mxu0 }
0x1014   :  { %v2366_v3 = vadd.f32 %v2365_v14, %v2333_v1  ;;  %v3931_v1 = vld [vmem:[#allocation6] sm:$0xff]  ;;  %v3394_v14 = vmov 9  }
0x1015   :  { %3206 = vset.pattern.permute.xlu1 %v3394_v14  ;;  %vm3112_vm11 = vcmp.gt.f32.partialorder %v3931_v1, 1e-06  ;;  %vm3126_vm12 = vcmp.lt.f32.partialorder %v3931_v1, -1e-06  ;;  %vm3145_vm15 = vcmp.lt.f32.partialorder %v3931_v1, 1e-06 }
0x1016   :  { %v2391_v57 = vadd.f32 %v2390_v15, %v2366_v3 }
0x1018   :  { %v2393_v6 = vadd.f32 %v2391_v57, %v3716_v43 }
0x101a   :  { %3239 = vtanh.f32 %v2393_v6  ;;  %v3934_v6 = vld [vmem:[#allocation8 + $0x6] ss:$0 sm:$0xff] }
0x1020   :  { %v3240_v9 = vpop.eup %3239 }
0x1021   :  { %2399 = vrot.lane.b32.xlu0 %v3240_v9, %s3390_s5  ;;  %v2395_v2 = vmul.f32 0.5, %v3240_v9 }
0x1023   :  { %v2396_v34 = vadd.f32 0.5, %v2395_v2 }
0x1025   :  { %v2397_v8 = vmul.f32 %v2396_v34, %v2195_v0 }
0x1093   :  { %v2400_v16 = vpop.permute.xlu0 %2399 }
0x1094   :  { %v2402_v31 = vmul.f32 %v2400_v16, %v2396_v34  ;;  %v2679_v16 = vld [vmem:[%s3994_s6 + $0x10] sm:$0xff] }
0x1096   :  { %2404 = vrot.lane.b32.xlu1 %v2402_v31, %s3391_s12 }
0x1108   :  { %v2405_v18 = vpop.permute.xlu1 %2404 }
0x1109   :  { %v2407_v19 = vadd.f32 %v2405_v18, %v2397_v8 }
0x110b   :  { %3241 = vtanh.f32 %v2407_v19 }
0x1111   :  { %v3242_v45 = vpop.eup %3241 }
0x1112   :  { %2410 = vrot.lane.b32.xlu2 %v3242_v45, %s3390_s5 }
0x116c   :  { %v2411_v20 = vpop.permute.xlu2 %2410 }
0x116d   :  { %v2413_v41 = vmul.f32 %v2411_v20, %v2396_v34  ;;  %v2680_v34 = vld [vmem:[%s3994_s6 + $0x18] sm:$0xff] }
0x116e   :  { %v2700_v18 = vand.u32 4294901760, %v2680_v34 }
0x116f   :  { %2416 = vrot.lane.b32.xlu0 %v2413_v41, %s3391_s12 }
0x1170   :  { %v2730_v20 = vsub.f32 %v2680_v34, %v2700_v18  ;;  %2701 = vmatpush.msrb.mxu0 %v2700_v18 }
0x11e1   :  { %v2417_v43 = vpop.permute.xlu0 %2416 }
0x11e2   :  { %v2418_v59 = vsel %vm932_vm3, %v2417_v43, 0 }
0x11e3   :  { %v2440_v38 = vand.u32 4294901760, %v2418_v59 }
0x11e5   :  { %v2441_v21 = vsub.f32 %v2418_v59, %v2440_v38  ;;  %2486 = vmatmul.f32.vlgmr.msrb.gmra.mxu3 %v2440_v38  ;;  %v2731_v59 = vand.u32 4294901760, %v2730_v20 }
0x11e6   :  { %2801 = vmatpush.msrb.mxu3 %v2700_v18 }
0x11e7   :  { %v2442_v22 = vand.u32 4294901760, %v2441_v21  ;;  %2516 = vmatmul.f32.vlgmr.msra.gmra.mxu0 %v2441_v21 }
0x11e9   :  { %v2443_v24 = vsub.f32 %v2441_v21, %v2442_v22  ;;  %2543 = vmatmul.f32.vlgmr.msra.gmra.mxu1 %v2442_v22  ;;  %v2732_v22 = vsub.f32 %v2730_v20, %v2731_v59 }
0x11eb   :  { %v2444_v33 = vand.u32 4294901760, %v2443_v24 }
0x11ed   :  { %2445 = vmatmul.f32.vlgmr.msrb.gmra.mxu2 %v2444_v33  ;;  %2601 = vmatmul.f32.vlgmr.msra.gmra.mxu3 %v2440_v38 }
0x11ee   :  { %2772 = vmatpush.msrb.mxu2 %v2730_v20  ;;  %v3213_v20 = vld [vmem:[#allocation8 + $0x4] ss:$0 sm:$0xff] }
0x11f5   :  { %2576 = vmatmul.f32.vlgmr.msra.gmra.mxu2 %v2440_v38 }
0x1264   :  { %v2517_v47 = vpop.f32.mrf.mxu0 }
0x1266   :  { %v2544_v63 = vpop.f32.mrf.mxu1 }
0x1268   :  { %v2487_v35 = vpop.f32.mrf.mxu3 }
0x1270   :  { %v2446_v36 = vpop.f32.mrf.mxu2  ;;  %v2602_v4 = vpop.f32.mrf.mxu3 }
0x1271   :  { %v2488_v37 = vadd.f32 %v2487_v35, %v2446_v36  ;;  %v2733_v35 = vand.u32 4294901760, %v2732_v22 }
0x1273   :  { %v2518_v40 = vadd.f32 %v2517_v47, %v2488_v37  ;;  %2734 = vmatpush.msrb.mxu1 %v2733_v35 }
0x1275   :  { %v2545_v26 = vadd.f32 %v2544_v63, %v2518_v40 }
0x1278   :  { %v2577_v42 = vpop.f32.mrf.mxu2 }
0x1279   :  { %v2578_v44 = vadd.f32 %v2577_v42, %v2545_v26  ;;  %v2678_v26 = vld [vmem:[%s3994_s6 + $0x8] sm:$0xff] }
0x127a   :  { %v2704_v42 = vand.u32 4294901760, %v2678_v26 }
0x127b   :  { %v2603_v46 = vadd.f32 %v2602_v4, %v2578_v44  ;;  %v2677_v44 = vld [vmem:[%s3994_s6] sm:$0xff]  ;;  %s3398_s6 = smov 127  }
0x127c   :  { %v2742_v4 = vsub.f32 %v2678_v26, %v2704_v42  ;;  %v3108_v26 = vsel %vm3103_vm8, %v3931_v1, inf }
0x127d   :  { %v2605_v48 = vadd.f32 %v2603_v46, %v3718_v12  ;;  %v2706_v46 = vand.u32 4294901760, %v2677_v44 }
0x127f   :  { %3243 = vtanh.f32 %v2605_v48  ;;  %v2743_v48 = vand.u32 4294901760, %v2742_v4 }
0x1285   :  { %v3244_v54 = vpop.eup %3243 }
0x1286   :  { %2611 = vrot.lane.b32.xlu1 %v3244_v54, %s3390_s5  ;;  %v2607_v27 = vmul.f32 0.5, %v3244_v54  ;;  %v2748_v54 = vsub.f32 %v2677_v44, %v2706_v46 }
0x1288   :  { %v2608_v7 = vadd.f32 0.5, %v2607_v27  ;;  %v2744_v27 = vsub.f32 %v2742_v4, %v2743_v48 }
0x128a   :  { %v2609_v53 = vmul.f32 %v2608_v7, %v2407_v19  ;;  %v2702_v19 = vand.u32 4294901760, %v2679_v16 }
0x128c   :  { %v2736_v41 = vsub.f32 %v2679_v16, %v2702_v19  ;;  %2803 = vmatpush.msrb.mxu3 %v2702_v19  ;;  %2703 = vmatpush.msrb.mxu0 %v2702_v19 }
0x128e   :  { %v2737_v38 = vand.u32 4294901760, %v2736_v41  ;;  %2775 = vmatpush.msrb.mxu2 %v2736_v41  ;;  %2805 = vmatpush.msrb.mxu3 %v2704_v42 }
0x128f   :  { %2705 = vmatpush.msrb.mxu0 %v2704_v42 }
0x1290   :  { %v2738_v24 = vsub.f32 %v2736_v41, %v2737_v38  ;;  %2778 = vmatpush.msrb.mxu2 %v2742_v4  ;;  %2807 = vmatpush.msrb.mxu3 %v2706_v46 }
0x1291   :  { %2707 = vmatpush.msrb.mxu0 %v2706_v46 }
0x1292   :  { %v2739_v36 = vand.u32 4294901760, %v2738_v24  ;;  %2781 = vmatpush.msrb.mxu2 %v2748_v54 }
0x1293   :  { %2830 = vmatpush.msra.mxu0 %v2731_v59 }
0x1294   :  { %2740 = vmatpush.msrb.mxu1 %v2739_v36 }
0x1295   :  { %2834 = vmatpush.msra.mxu0 %v2737_v38 }
0x1297   :  { %2838 = vmatpush.msra.mxu0 %v2743_v48 }
0x12f8   :  { %v2612_v11 = vpop.permute.xlu1 %2611 }
0x12f9   :  { %v2614_v51 = vmul.f32 %v2612_v11, %v2608_v7  ;;  %v2745_v11 = vand.u32 4294901760, %v2744_v27 }
0x12fb   :  { %2616 = vrot.lane.b32.xlu2 %v2614_v51, %s3391_s12  ;;  %2746 = vmatpush.msrb.mxu1 %v2745_v11 }
0x1355   :  { %v2617_v29 = vpop.permute.xlu2 %2616 }
0x1356   :  { %v3920_v56 = vadd.f32 %v2617_v29, %v2609_v53 }
0x1358   :  { %3245 = vtanh.f32 %v3920_v56 }
0x1359   :  { %3247 = vrcp.f32 %v3392_v5 }
0x135e   :  { %v3246_v17 = vpop.eup %3245 }
0x135f   :  { %2622 = vrot.lane.b32.xlu0 %v3246_v17, %s3390_s5  ;;  %v3248_v28 = vpop.eup %3247 }
0x1360   :  { %v2634_v25 = vmul.f32 32.0, %v3248_v28  ;;  %vm2638_vm4 = vweird.f32 %v3248_v28 }
0x1362   :  { %v2635_v49 = vsub.f32 1.0, %v2634_v25 }
0x1364   :  { %v2636_v50 = vmul.f32 %v3248_v28, %v2635_v49 }
0x1366   :  { %v2637_v32 = vadd.f32 %v3248_v28, %v2636_v50 }
0x1368   :  { %v2639_v52 = vsel %vm2638_vm4, %v3248_v28, %v2637_v32 }
0x13d1   :  { %v2623_v12 = vpop.permute.xlu0 %2622 }
0x13d2   :  { %v2625_v61 = vmul.f32 %v2623_v12, %v2608_v7  ;;  %v2749_v7 = vand.u32 4294901760, %v2748_v54 }
0x13d4   :  { %2627 = vrot.lane.b32.xlu1 %v2625_v61, %s3391_s12  ;;  %v2750_v51 = vsub.f32 %v2748_v54, %v2749_v7  ;;  %2842 = vmatpush.msra.mxu0 %v2749_v7  ;;  %v3104_v7 = vsel %vm3103_vm8, %v3931_v1, -inf }
0x13d6   :  { %v2751_v53 = vand.u32 4294901760, %v2750_v51 }
0x13d8   :  { %2752 = vmatpush.msrb.mxu1 %v2751_v53 }
0x13da   :  { %2861 = vmatpush.msra.mxu1 %v2700_v18 }
0x13dc   :  { %2863 = vmatpush.msra.mxu1 %v2702_v19 }
0x13de   :  { %2865 = vmatpush.msra.mxu1 %v2704_v42 }
0x13e0   :  { %2867 = vmatpush.msra.mxu1 %v2706_v46 }
0x1446   :  { %v3925_v0 = vpop.permute.xlu1 %2627 }
0x1447   :  { %v2630_v58 = vsel %vm932_vm3, %v3925_v0, 0.0 }
0x1448   :  { %2631 = vadd.xlane.f32.xlu2 %v2630_v58 }
0x1460   :  { %3053 = vrot.lane.b32.xlu2 %v3934_v6, %s3395_s14 }
0x14bb   :  { %v2632_v10 = vpop.xlane.xlu2 %2631 }
0x14bc   :  { %v2640_v13 = vmul.f32 %v2639_v52, %v2632_v10 }
0x14be   :  { %v2641_v23 = vsub.f32 %v2625_v61, %v2640_v13 }
0x14c0   :  { %v2642_v39 = vmul.f32 %v2641_v23, %v2641_v23 }
0x14c2   :  { %2644 = vrot.lane.b32.xlu0 %v2642_v39, %s3391_s12 }
0x14c3   :  { %v3054_v25 = vpop.permute.xlu2 %3053 }
0x14ca   :  { %2666 = vrot.lane.b32.xlu0 %v3210_v55, %s3393_s13 }
0x14d2   :  { %2673 = vrot.lane.b32.xlu0 %v3211_v60, %s3393_s13 }
0x1534   :  { %v2645_v30 = vpop.permute.xlu0 %2644 }
0x1535   :  { %v2647_v62 = vsel %vm932_vm3, %v2645_v30, 0.0 }
0x1536   :  { %2648 = vadd.xlane.f32.xlu1 %v2647_v62  ;;  %v2875_v62 = vld [vmem:[%s3995_s7 + $0x8] sm:$0xff] }
0x1537   :  { %v2895_v14 = vand.u32 4294901760, %v2875_v62 }
0x1539   :  { %2896 = vmatpush.msra.mxu2 %v2895_v14 }
0x153c   :  { %v2667_v8 = vpop.permute.xlu0 %2666 }
0x1544   :  { %v2674_v47 = vpop.permute.xlu0 %2673 }
0x154f   :  { %3047 = vperm.xlu1 %3206, %v3931_v1  }
0x15a9   :  { %v2649_v3 = vpop.xlane.xlu1 %2648 }
0x15aa   :  { %v2650_v15 = vmul.f32 %v2649_v3, %v2639_v52  ;;  %v2874_v3 = vld [vmem:[%s3995_s7] sm:$0xff]  ;;  %s3399_s7 = smov 124  }
0x15ac   :  { %v2651_v57 = vadd.f32 1e-05, %v2650_v15  ;;  %v2923_v15 = vsub.f32 %v2875_v62, %v2895_v14 }
0x15ae   :  { %3249 = vrsqrt.f32 %v2651_v57  ;;  %vm2658_vm6 = vweird.f32 %v2651_v57 }
0x15b4   :  { %v3250_v9 = vpop.eup %3249 }
0x15b5   :  { %v2653_v2 = vmul.f32 %v3250_v9, %v2651_v57  ;;  %vm2659_vm5 = vweird.f32 %v3250_v9  ;;  %v2897_v57 = vand.u32 4294901760, %v2874_v3 }
0x15b6   :  { %vm2660_vm7 = vmor %vm2658_vm6, %vm2659_vm5 }
0x15b7   :  { %v2654_v31 = vmul.f32 %v3250_v9, %v2653_v2  ;;  %v2929_v2 = vsub.f32 %v2874_v3, %v2897_v57  ;;  %2898 = vmatpush.msra.mxu2 %v2897_v57 }
0x15b9   :  { %v2655_v45 = vmul.f32 0.5, %v2654_v31  ;;  %v2930_v16 = vand.u32 4294901760, %v2929_v2 }
0x15bb   :  { %v2656_v43 = vsub.f32 1.5, %v2655_v45 }
0x15bd   :  { %v2657_v21 = vmul.f32 %v3250_v9, %v2656_v43 }
0x15bf   :  { %v2661_v33 = vsel %vm2660_vm7, %v3250_v9, %v2657_v21  ;;  %v2924_v9 = vand.u32 4294901760, %v2923_v15 }
0x15c0   :  { %v2662_v37 = vmul.f32 %v2661_v33, %v2641_v23 }
0x15c1   :  { %v3048_v13 = vpop.permute.xlu1 %3047  ;;  %v2925_v34 = vsub.f32 %v2923_v15, %v2924_v9 }
0x15c2   :  { %v2669_v40 = vmul.f32 %v2667_v8, %v2662_v37  ;;  %v3050_v23 = vsub.f32 %v3931_v1, %v3048_v13  ;;  %v2931_v8 = vsub.f32 %v2929_v2, %v2930_v16 }
0x15c3   :  { %v2926_v31 = vand.u32 4294901760, %v2925_v34 }
0x15c4   :  { %v2676_v63 = vadd.f32 %v2674_v47, %v2669_v40  ;;  %v3056_v39 = vmul.f32 %v3054_v25, %v3050_v23  ;;  %v2932_v18 = vand.u32 4294901760, %v2931_v8 }
0x15c5   :  { %2927 = vmatpush.msra.mxu3 %v2926_v31 }
0x15c6   :  { %2684 = vrot.lane.b32.xlu0 %v2676_v63, %s3391_s12  ;;  %v3066_v55 = vsub.f32 0.0, %v3056_v39 }
0x15c7   :  { %2933 = vmatpush.msra.mxu3 %v2932_v18 }
0x15ce   :  { %3057 = vrot.lane.b32.xlu0 %v3931_v1, %s3396_s1 }
0x15d6   :  { %3062 = vrot.lane.b32.xlu0 %v3934_v6, %s3397_s19 }
0x1638   :  { %v2685_v29 = vpop.permute.xlu0 %2684 }
0x1639   :  { %v2686_v17 = vsel %vm932_vm3, %v2685_v29, 0 }
0x163a   :  { %v2708_v12 = vand.u32 4294901760, %v2686_v17 }
0x163c   :  { %v2709_v61 = vsub.f32 %v2686_v17, %v2708_v12  ;;  %2754 = vmatmul.f32.vlgmr.msrb.gmra.mxu1 %v2708_v12 }
0x163d   :  { %2980 = vmatpush.msrb.mxu1 %v2895_v14 }
0x163e   :  { %v2710_v58 = vand.u32 4294901760, %v2709_v61  ;;  %2784 = vmatmul.f32.vlgmr.msrb.gmra.mxu2 %v2709_v61 }
0x163f   :  { %2982 = vmatpush.msrb.mxu1 %v2897_v57  ;;  %3007 = vmatpush.msrb.mxu2 %v2924_v9 }
0x1640   :  { %v2711_v5 = vsub.f32 %v2709_v61, %v2710_v58  ;;  %2811 = vmatmul.f32.vlgmr.msrb.gmra.mxu3 %v2710_v58  ;;  %v3058_v28 = vpop.permute.xlu0 %3057 }
0x1641   :  { %v3060_v49 = vsub.f32 %v3931_v1, %v3058_v28  ;;  %3011 = vmatpush.msrb.mxu2 %v2930_v16  ;;  %3032 = vmatpush.msrb.mxu3 %v2895_v14  ;;  %v3214_v14 = vld [vmem:[#allocation8 + $0x5] ss:$0 sm:$0xff] }
0x1642   :  { %v2712_v50 = vand.u32 4294901760, %v2711_v5  ;;  %v3127_v5 = vsel %vm3126_vm12, %v3931_v1, 0.0 }
0x1643   :  { %v3061_v32 = vmul.f32 %v3060_v49, %v3054_v25  ;;  %3034 = vmatpush.msrb.mxu3 %v2897_v57 }
0x1644   :  { %2713 = vmatmul.f32.vlgmr.msrb.gmra.mxu0 %v2712_v50  ;;  %2869 = vmatmul.f32.vlgmr.msra.gmra.mxu1 %v2708_v12 }
0x1645   :  { %3068 = vrot.lane.b32.xlu0 %v3061_v32, %s3396_s1  ;;  %2955 = vmatpush.msrb.mxu0 %v2923_v15 }
0x1647   :  { %2958 = vmatpush.msrb.mxu0 %v2929_v2 }
0x1648   :  { %v3063_v52 = vpop.permute.xlu0 %3062 }
0x1649   :  { %v3065_v10 = vmul.f32 %v3063_v52, %v3060_v49  ;;  %v3404_v52 = vmov 13  }
0x164a   :  { %3207 = vset.pattern.permute.xlu0 %v3404_v52 }
0x164b   :  { %3078 = vrot.lane.b32.xlu2 %v3065_v10, %s3396_s1 }
0x164c   :  { %2844 = vmatmul.f32.vlgmr.msra.gmra.mxu0 %v2708_v12  ;;  %v3113_v12 = vsel %vm3112_vm11, %v3931_v1, 0.0 }
0x164d   :  { %3073 = vrot.lane.b32.xlu0 %v3061_v32, %s3398_s6 }
0x16a5   :  { %v3079_v60 = vpop.permute.xlu2 %3078 }
0x16a6   :  { %v3081_v30 = vadd.f32 %v3079_v60, %v3066_v55 }
0x16a8   :  { %3091 = vrot.lane.b32.xlu1 %v3081_v30, %s3396_s1 }
0x16b7   :  { %v3069_v19 = vpop.permute.xlu0 %3068 }
0x16b8   :  { %v3071_v45 = vsub.f32 %v3066_v55, %v3069_v19 }
0x16b9   :  { %v2755_v59 = vpop.f32.mrf.mxu1 }
0x16ba   :  { %3083 = vrot.lane.b32.xlu0 %v3071_v45, %s3395_s14 }
0x16bf   :  { %v3074_v41 = vpop.permute.xlu0 %3073 }
0x16c0   :  { %v3076_v43 = vsub.f32 %v3065_v10, %v3074_v41  ;;  %v3405_v10 = vmov 0  }
0x16c1   :  { %v2714_v38 = vpop.f32.mrf.mxu0  ;;  %v2785_v24 = vpop.f32.mrf.mxu2  ;;  %v3146_v13 = vsel %vm3145_vm15, 1, %v3405_v10 }
0x16c2   :  { %v2715_v21 = vadd.f32 %v3213_v20, %v2714_v38  ;;  %3087 = vrot.lane.b32.xlu2 %v3076_v43, %s3399_s7  ;;  %v2870_v40 = vpop.f32.mrf.mxu1 }
0x16c3   :  { %v2812_v35 = vpop.f32.mrf.mxu3 }
0x16c4   :  { %v2756_v22 = vadd.f32 %v2755_v59, %v2715_v21 }
0x16c6   :  { %v2786_v33 = vadd.f32 %v2785_v24, %v2756_v22  ;;  %v3156_v24 = vsel %vm932_vm3, %v3925_v0, %v3920_v56 }
0x16c8   :  { %v2813_v36 = vadd.f32 %v2812_v35, %v2786_v33 }
0x16c9   :  { %v2845_v37 = vpop.f32.mrf.mxu0 }
0x16ca   :  { %v2846_v47 = vadd.f32 %v2845_v37, %v2813_v36  ;;  %3114 = vrot.lane.b32.xlu2 %v3934_v6, %s3400_s26 }
0x16cc   :  { %v2871_v63 = vadd.f32 %v2870_v40, %v2846_v47 }
0x16ce   :  { %3251 = vtanh.f32 %v2871_v63 }
0x16d2   :  { %3109 = vmin.xlane.f32.xlu1 %v3108_v26  ;;  %3128 = vrot.lane.b32.xlu2 %v3934_v6, %s3401_s4 }
0x16d4   :  { %v3252_v42 = vpop.eup %3251 }
0x16d5   :  { %v2879_v44 = vsel %vm518_vm2, %v3252_v42, 0  ;;  %vm3159_vm2 = vcmask 547840  }
0x16d6   :  { %v2899_v4 = vand.u32 4294901760, %v2879_v44 }
0x16d8   :  { %v2900_v46 = vsub.f32 %v2879_v44, %v2899_v4  ;;  %2935 = vmatmul.f32.vlgmr.msra.gmra.mxu3 %v2899_v4 }
0x16da   :  { %2961 = vmatmul.f32.vlgmr.msrb.gmra.mxu0 %v2900_v46  ;;  %v2901_v48 = vand.u32 4294901760, %v2900_v46 }
0x16dc   :  { %2986 = vmatmul.f32.vlgmr.msrb.gmra.mxu1 %v2901_v48  ;;  %v2902_v54 = vsub.f32 %v2900_v46, %v2901_v48 }
0x16de   :  { %v2903_v27 = vand.u32 4294901760, %v2902_v54 }
0x16e0   :  { %2904 = vmatmul.f32.vlgmr.msra.gmra.mxu2 %v2903_v27  ;;  %3036 = vmatmul.f32.vlgmr.msrb.gmra.mxu3 %v2899_v4 }
0x16e4   :  { %3105 = vmax.xlane.f32.xlu0 %v3104_v7 }
0x16e8   :  { %3013 = vmatmul.f32.vlgmr.msrb.gmra.mxu2 %v2899_v4 }
0x16f8   :  { %3148 = vperm.xlu0 %3207, %v3146_v13  }
0x171a   :  { %v3092_v51 = vpop.permute.xlu1 %3091 }
0x171c   :  { %v3088_v6 = vpop.permute.xlu2 %3087 }
0x1724   :  { %v3115_v17 = vpop.permute.xlu2 %3114 }
0x1725   :  { %v3117_v61 = vmul.f32 %v3115_v17, %v3113_v12 }
0x172c   :  { %v3084_v11 = vpop.permute.xlu0 %3083  ;;  %v3129_v28 = vpop.permute.xlu2 %3128 }
0x172d   :  { %v3095_v53 = vsel %vm3094_vm9, %v3084_v11, %v3088_v6  ;;  %v3131_v50 = vmul.f32 %v3129_v28, %v3127_v5 }
0x172e   :  { %v3097_v29 = vsel %vm3096_vm10, %v3095_v53, %v3092_v51 }
0x172f   :  { %3099 = vrot.lane.b32.xlu2 %v3097_v29, %s3402_s3 }
0x1745   :  { %v3110_v49 = vpop.xlane.xlu1 %3109 }
0x1746   :  { %vm3111_vm14 = vcmp.lt.f32.partialorder %v3110_v49, -1e-06 }
0x1747   :  { %v3134_v32 = vsel %vm3111_vm14, %v3131_v50, 0.0 }
0x1757   :  { %v3106_v58 = vpop.xlane.xlu0 %3105  ;;  %v2962_v2 = vpop.f32.mrf.mxu0 }
0x1758   :  { %vm3107_vm13 = vcmp.gt.f32.partialorder %v3106_v58, 1e-06 }
0x1759   :  { %v3120_v25 = vsel %vm3107_vm13, %v3117_v61, 0.0  ;;  %v2987_v16 = vpop.f32.mrf.mxu1 }
0x175a   :  { %3122 = vrot.lane.b32.xlu2 %v3120_v25, %s3403_s27 }
0x175b   :  { %v2936_v57 = vpop.f32.mrf.mxu3 }
0x1762   :  { %3136 = vrot.lane.b32.xlu2 %v3134_v32, %s3403_s27 }
0x1763   :  { %v2905_v3 = vpop.f32.mrf.mxu2  ;;  %v3037_v19 = vpop.f32.mrf.mxu3 }
0x1764   :  { %v2906_v15 = vadd.f32 %v3214_v14, %v2905_v3 }
0x1766   :  { %v2937_v9 = vadd.f32 %v2936_v57, %v2906_v15 }
0x1768   :  { %v2963_v34 = vadd.f32 %v2962_v2, %v2937_v9 }
0x176a   :  { %v2988_v31 = vadd.f32 %v2987_v16, %v2963_v34  ;;  %v3149_v43 = vpop.permute.xlu0 %3148 }
0x176b   :  { %v3014_v8 = vpop.f32.mrf.mxu2  ;;  %vm3150_vm0 = vcmp.eq.s32.totalorder %v3149_v43, 1 }
0x176c   :  { %v3015_v18 = vadd.f32 %v3014_v8, %v2988_v31 }
0x176e   :  { %v3038_v45 = vadd.f32 %v3037_v19, %v3015_v18 }
0x1770   :  { %3253 = vtanh.f32 %v3038_v45 }
0x1776   :  { %v3254_v20 = vpop.eup %3253 }
0x1777   :  { %v3043_v41 = vmul.f32 0.1, %v3254_v20 }
0x1779   :  { %v3044_v59 = vadd.f32 %v3043_v41, %v3931_v1 }
0x1789   :  { %v3100_v23 = vpop.permute.xlu2 %3099 }
0x178a   :  { %v3102_v55 = vadd.f32 %v3100_v23, %v3931_v1 }
0x17b4   :  { %v3123_v39 = vpop.permute.xlu2 %3122 }
0x17b5   :  { %v3125_v60 = vadd.f32 %v3123_v39, %v3102_v55 }
0x17bc   :  { %v3137_v30 = vpop.permute.xlu2 %3136 }
0x17bd   :  { %v3139_v62 = vadd.f32 %v3137_v30, %v3125_v60 }
0x17bf   :  { %3141 = vrot.lane.b32.xlu2 %v3139_v62, %s3406_s28 }
0x1819   :  { %v3142_v38 = vpop.permute.xlu2 %3141 }
0x181a   :  { %v3144_v21 = vadd.f32 %v3142_v38, %v3044_v59 }
0x181c   :  { %v3151_v22 = vsel %vm3150_vm0, 0.0, %v3144_v21 }
0x181d   :  { %3153 = vrot.lane.b32.xlu1 %v3151_v22, %s3390_s5 }
0x188f   :  { %v3154_v33 = vpop.permute.xlu1 %3153 }
0x1890   :  { %v3158_v1 = vsel %vm3157_vm1, %v3156_v24, %v3154_v33 }
0x1891   :  { %v3160_v35 = vsel %vm3159_vm2, %v3158_v1, 0.0 }
0x1892   :  { %3161 = vst [vmem:[#allocation11] sm:$0xff] %v3160_v35 }
0x1893   :  { %3172 = dma.vmem_to_hbm [thread:$0]  %s3168_s30, 128, %s3170_s11, [#allocation5]  }
0x1894   :  { %3381 = dma.done.wait [#allocation5], 128  }
0x1895   :  { %3382 = vsyncadd [#allocation5], 4294967168 }
0x1896   :  { %3177 = vsyncpa [#allocation4], 1 }
0x1897   :  { %3178 = vsyncpa [#allocation7], 1 }
0x1898   :  { %3179 = vsyncpa [#allocation10], 1 }
0x1899   :  { %3180 = vsyncpa [#allocation5], 1 }

</bundles_post_ra>
